<compile_context>
chip_gen: v5e
topology: v5e:2x2
jax: 0.10.0
libtpu: 0.0.40
codegen_flags: <defaults>
</compile_context>

<pallas_src>
import functools

import jax
import jax.numpy as jnp
from jax import lax
from jax.experimental import pallas as pl
from jax.experimental.pallas import tpu as pltpu


def _round_up(x, m):
    return (x + m - 1) // m * m


def _pad2(a, rows, cols):
    return jnp.pad(a, ((0, rows - a.shape[0]), (0, cols - a.shape[1])))


# ----------------------------------------------------------------------------
# Pallas kernels
# ----------------------------------------------------------------------------
def _conv_mm_kernel(x_ref, w_ref, sb_ref, o_ref):
    """relu((x @ w) * scale + bias); x/w bf16 operands, f32 MXU accumulation."""
    acc = jnp.dot(x_ref[...], w_ref[...], preferred_element_type=jnp.float32)
    y = jnp.maximum(acc * sb_ref[0:1, :] + sb_ref[1:2, :], 0.0)
    o_ref[...] = y.astype(o_ref.dtype)


def _tail_kernel(p3_ref,
                 w3_ref, sb3_ref, w4_ref, sb4_ref, w5_ref, sb5_ref,
                 w6_ref, sb6_ref, w7_ref, b7_ref, w8_ref, b8_ref,
                 o_ref):
    """Fused conv3..conv6 + fc1 + fc2.  Everything resident in VMEM."""

    def conv_bn_relu(x, w_ref, sb_ref):
        acc = jnp.dot(x, w_ref[...], preferred_element_type=jnp.float32)
        y = jnp.maximum(acc * sb_ref[0:1, :] + sb_ref[1:2, :], 0.0)
        return y.astype(jnp.bfloat16)

    h = conv_bn_relu(p3_ref[...], w3_ref, sb3_ref)   # conv3 (block-diag im2col)
    h = conv_bn_relu(h, w4_ref, sb4_ref)             # conv4 (valid 2x2 taps)
    h = conv_bn_relu(h, w5_ref, sb5_ref)             # conv5 (center tap only)
    h = conv_bn_relu(h, w6_ref, sb6_ref)             # conv6 (center tap only)
    # fc1 + ReLU (bias only - no dummy scale)
    h = jnp.dot(h, w7_ref[...], preferred_element_type=jnp.float32) + b7_ref[...]
    h = jnp.maximum(h, 0.0).astype(jnp.bfloat16)
    # fc2 (no ReLU)
    o_ref[...] = (jnp.dot(h, w8_ref[...], preferred_element_type=jnp.float32)
                  + b8_ref[...])


# ----------------------------------------------------------------------------
# pallas_call wrappers
# ----------------------------------------------------------------------------
def _fused_conv_matmul(patches, w_p, sb_p, out_valid_n):
    """patches (M, K) float; w_p (Kp, Np) bf16 (pre-padded); sb_p (2, Np) f32."""
    M, _ = patches.shape
    Kp, Np = w_p.shape
    # M tiling: sublane aligned (16 for bf16 outputs); split into 2 parallel
    # blocks when possible so v7x's second TensorCore has work.
    if M >= 32 and M % 32 == 0:
        tm = M // 2
    else:
        tm = _round_up(M, 16)
    Mp = _round_up(M, tm)
    x_p = _pad2(patches, Mp, Kp).astype(jnp.bfloat16)

    cost = pl.CostEstimate(
        flops=2 * Mp * Kp * Np,
        transcendentals=0,
        bytes_accessed=x_p.size * 2 + w_p.size * 2 + sb_p.size * 4 + Mp * Np * 2)

    out = pl.pallas_call(
        _conv_mm_kernel,
        out_shape=jax.ShapeDtypeStruct((Mp, Np), jnp.bfloat16),
        grid=(Mp // tm,),
        in_specs=[
            pl.BlockSpec((tm, Kp), lambda i: (i, 0)),   # X tile over M
            pl.BlockSpec((Kp, Np), lambda i: (0, 0)),   # full weight (resident)
            pl.BlockSpec((2, Np), lambda i: (0, 0)),    # [scale; bias]
        ],
        out_specs=pl.BlockSpec((tm, Np), lambda i: (i, 0)),
        compiler_params=pltpu.CompilerParams(dimension_semantics=("parallel",)),
        cost_estimate=cost,
    )(x_p, w_p, sb_p)
    return out[:M, :out_valid_n]


def _fused_tail(p3_p, t):
    """Single pallas_call for conv3..conv6 + fc1 + fc2 on padded inputs."""
    args = (p3_p, t["w3"], t["sb3"], t["w4"], t["sb4"], t["w5"], t["sb5"],
            t["w6"], t["sb6"], t["w7"], t["b7"], t["w8"], t["b8"])
    Mp = p3_p.shape[0]
    Nout = t["w8"].shape[1]
    flops = 2 * Mp * sum(int(w.shape[0]) * int(w.shape[1])
                         for w in (t["w3"], t["w4"], t["w5"], t["w6"],
                                   t["w7"], t["w8"]))
    bytes_accessed = (sum(int(a.size) * a.dtype.itemsize for a in args)
                      + Mp * Nout * 4)
    cost = pl.CostEstimate(flops=flops, transcendentals=0,
                           bytes_accessed=bytes_accessed)

    return pl.pallas_call(
        _tail_kernel,
        out_shape=jax.ShapeDtypeStruct((Mp, Nout), jnp.float32),
        in_specs=[pl.BlockSpec(memory_space=pltpu.MemorySpace.VMEM)
                  for _ in args],
        out_specs=pl.BlockSpec(memory_space=pltpu.MemorySpace.VMEM),
        cost_estimate=cost,
    )(*args)


# ----------------------------------------------------------------------------
# Plain-JAX glue: NHWC im2col (feature order = (kh, kw, c), no transposes)
# ----------------------------------------------------------------------------
def _im2col_nhwc(x, kh, kw, stride, pad):
    n, h, w, c = x.shape
    xp = jnp.pad(x, ((0, 0), (pad, pad), (pad, pad), (0, 0)))
    oh = (h + 2 * pad - kh) // stride + 1
    ow = (w + 2 * pad - kw) // stride + 1
    cols = []
    for i in range(kh):
        for j in range(kw):
            cols.append(xp[:, i:i + stride * (oh - 1) + 1:stride,
                           j:j + stride * (ow - 1) + 1:stride, :])
    patches = jnp.concatenate(cols, axis=-1)        # (n, oh, ow, kh*kw*c)
    return patches.reshape(n * oh * ow, kh * kw * c), oh, ow


# ----------------------------------------------------------------------------
# Parameter setup (deterministic, synthetic) and packing
# ----------------------------------------------------------------------------
def init_params(key, label_count, base_filter_size=12, img_dim=(16, 16)):
    filt = [m * base_filter_size for m in (1, 2, 4, 6, 8, 10)]
    convs_cfg = [
        (3,       filt[0], 5, 2, 2),
        (filt[0], filt[1], 5, 2, 2),
        (filt[1], filt[2], 3, 2, 1),
        (filt[2], filt[3], 3, 2, 1),
        (filt[3], filt[4], 3, 2, 1),
        (filt[4], filt[5], 3, 2, 1),
    ]
    params = {"convs": [], "bns": []}
    for (ic, oc, k, s, p) in convs_cfg:
        key, k1, k2, k3, k4, k5, k6 = jax.random.split(key, 7)
        w = jax.random.normal(k1, (oc, ic, k, k), jnp.float32) * 0.05
        b = jax.random.normal(k2, (oc,), jnp.float32) * 0.05
        gamma = 1.0 + 0.1 * jax.random.normal(k3, (oc,), jnp.float32)
        beta = 0.1 * jax.random.normal(k4, (oc,), jnp.float32)
        mean = 0.1 * jax.random.normal(k5, (oc,), jnp.float32)
        var = 1.0 + 0.1 * jax.random.uniform(k6, (oc,), jnp.float32)
        params["convs"].append((w, b, s, p))
        params["bns"].append((gamma, beta, mean, var))

    out_size = img_dim[0]
    for (k, s, p) in [(5, 2, 2), (5, 2, 2), (3, 2, 1), (3, 2, 1), (3, 2, 1), (3, 2, 1)]:
        out_size = int((out_size - k + 2 * p) / s + 1)
    final_layer_size = filt[-1] * out_size * out_size

    key, k1, k2, k3, k4 = jax.random.split(key, 5)
    w1 = jax.random.normal(k1, (1024, final_layer_size), jnp.float32) * 0.03
    b1 = jax.random.normal(k2, (1024,), jnp.float32) * 0.03
    w2 = jax.random.normal(k3, (label_count, 1024), jnp.float32) * 0.03
    b2 = jax.random.normal(k4, (label_count,), jnp.float32) * 0.03
    params["fc"] = [(w1, b1), (w2, b2)]
    return params


def pack_params(params, eps=1e-5):
    """Fold BN into scale/bias, flatten conv weights to matmul layout, pad
    K/N to multiples of 128 and cast matmul operands to bf16.

    Tail packing assumes the 16x16-input spatial schedule
    (16 -> 8 -> 4 -> 2 -> 1 -> 1 -> 1), i.e. img_dim=(16, 16).
    """
    def fold(idx):
        w, b, _, _ = params["convs"][idx]
        g, bt, m, v = params["bns"][idx]
        inv = g / jnp.sqrt(v + eps)
        return w, inv, bt + (b - m) * inv

    def wpad(w):
        return _pad2(w, _round_up(w.shape[0], 128),
                     _round_up(w.shape[1], 128)).astype(jnp.bfloat16)

    def sbpad(s, c):
        np_ = _round_up(s.shape[0], 128)
        return jnp.stack([jnp.pad(s, (0, np_ - s.shape[0])),
                          jnp.pad(c, (0, np_ - c.shape[0]))]).astype(jnp.float32)

    def bpad(b):
        np_ = _round_up(b.shape[0], 128)
        return jnp.pad(b, (0, np_ - b.shape[0])).reshape(1, np_).astype(jnp.float32)

    packed = {"front": []}
    for idx in (0, 1):                                  # conv1, conv2
        w, s, c = fold(idx)
        oc, ic, kh, kw = w.shape
        wf = w.transpose(2, 3, 1, 0).reshape(kh * kw * ic, oc)   # (kh,kw,c) order
        packed["front"].append({"w": wpad(wf), "sb": sbpad(s, c)})

    # conv3: 4x4 -> 2x2.  Block-diagonal over the 4 output positions so the
    # result lands directly in per-batch (h, w, c) layout for conv4.
    w3, s3, c3 = fold(2)
    oc3, ic3, kh3, kw3 = w3.shape
    k3 = kh3 * kw3 * ic3
    w3f = w3.transpose(2, 3, 1, 0).reshape(k3, oc3)              # (216, 48)
    w3blk = jnp.zeros((4 * k3, 4 * oc3), w3f.dtype)
    for p in range(4):
        w3blk = w3blk.at[p * k3:(p + 1) * k3, p * oc3:(p + 1) * oc3].set(w3f)

    # conv4: 2x2 -> 1x1 (k=3, s=2, p=1): only kernel taps (1:,1:) see data.
    w4, s4, c4 = fold(3)
    w4eff = w4[:, :, 1:, 1:].transpose(2, 3, 1, 0).reshape(4 * w4.shape[1],
                                                           w4.shape[0])
    # conv5/conv6: 1x1 -> 1x1: only the center tap sees data.
    w5, s5, c5 = fold(4)
    w6, s6, c6 = fold(5)
    (wfc1, bfc1), (wfc2, bfc2) = params["fc"]

    packed["tail"] = {
        "w3": wpad(w3blk), "sb3": sbpad(jnp.tile(s3, 4), jnp.tile(c3, 4)),
        "w4": wpad(w4eff), "sb4": sbpad(s4, c4),
        "w5": wpad(w5[:, :, 1, 1].T), "sb5": sbpad(s5, c5),
        "w6": wpad(w6[:, :, 1, 1].T), "sb6": sbpad(s6, c6),
        "w7": wpad(wfc1.T), "b7": bpad(bfc1),
        "w8": wpad(wfc2.T), "b8": bpad(bfc2),
    }
    return packed


# ----------------------------------------------------------------------------
# Forward passes
# ----------------------------------------------------------------------------
# TODO(synk): BatchNorm training-mode (batch statistics + running-stat update)
# is not implemented; this reproduces eval/inference-mode BN semantics.
def mask_cnn_forward(x, packed, *, front_cfg, label_count):
    n = x.shape[0]
    h = x.transpose(0, 2, 3, 1)                       # NCHW -> NHWC, once
    # conv1, conv2: per-layer fused matmul kernels (im2col glue in XLA)
    for (k, s, p, oc), layer in zip(front_cfg, packed["front"]):
        patches, oh, ow = _im2col_nhwc(h, k, k, s, p)
        y = _fused_conv_matmul(patches, layer["w"], layer["sb"], oc)
        h = y.reshape(n, oh, ow, oc)
    # conv3 patches, flattened per batch (output-position major) for the tail.
    p3, _, _ = _im2col_nhwc(h, 3, 3, 2, 1)            # (n*2*2, 216)
    p3 = p3.reshape(n, -1)                            # (n, 864)
    t = packed["tail"]
    mp = _round_up(max(n, 8), 8)
    p3_p = _pad2(p3, mp, t["w3"].shape[0]).astype(jnp.bfloat16)
    out = _fused_tail(p3_p, t)                        # conv3..conv6 + fc1 + fc2
    return out[:n, :label_count]


def reference_forward(x, params, eps=1e-5):
    """Pure-JAX reference (lax.conv, f32 HIGHEST) for correctness checking."""
    for (w, b, s, p), (g, bt, m, v) in zip(params["convs"], params["bns"]):
        y = lax.conv_general_dilated(
            x, w, (s, s), [(p, p), (p, p)],
            dimension_numbers=("NCHW", "OIHW", "NCHW"),
            precision=lax.Precision.HIGHEST)
        y = y + b[None, :, None, None]
        y = ((y - m[None, :, None, None]) / jnp.sqrt(v + eps)[None, :, None, None]
             * g[None, :, None, None] + bt[None, :, None, None])
        x = jnp.maximum(y, 0.0)
    n = x.shape[0]
    x = x.reshape(n, -1)
    (w1, b1), (w2, b2) = params["fc"]
    x = jnp.maximum(jnp.dot(x, w1.T, precision=lax.Precision.HIGHEST) + b1, 0.0)
    x = jnp.dot(x, w2.T, precision=lax.Precision.HIGHEST) + b2
    return x


if __name__ == "__main__":
    key = jax.random.PRNGKey(0)
    kx, kp = jax.random.split(key)

    batch = 2
    img_dim = (16, 16)    # 16 -> 8 -> 4 -> 2 -> 1 -> 1 -> 1 spatial
    label_count = 10
    base_filter_size = 12

    x = jax.random.normal(kx, (batch, 3, img_dim[0], img_dim[1]), jnp.float32)
    params = init_params(kp, label_count, base_filter_size=base_filter_size,
                         img_dim=img_dim)
    packed = pack_params(params)

    front_cfg = ((5, 2, 2, 1 * base_filter_size), (5, 2, 2, 2 * base_filter_size))
    fwd = jax.jit(functools.partial(mask_cnn_forward,
                                    front_cfg=front_cfg,
                                    label_count=label_count))

    out = jax.block_until_ready(fwd(x, packed))
    assert out.shape == (batch, label_count), out.shape

    ref = reference_forward(x, params)
    rel_err = float(jnp.max(jnp.abs(out - ref)) / (1.0 + jnp.max(jnp.abs(ref))))
    assert rel_err < 1e-2, f"mismatch vs reference: rel_err={rel_err}"

    print("KERNEL_OK")
</pallas_src>

<mosaic_0001>
module attributes {stable_mosaic.version = 11 : i64} {
  func.func @_conv_mm_kernel(%arg0: i32, %arg1: memref<64x128xbf16, #tpu.memory_space<vmem>>, %arg2: memref<128x128xbf16, #tpu.memory_space<vmem>>, %arg3: memref<2x128xf32, #tpu.memory_space<vmem>>, %arg4: memref<64x128xbf16, #tpu.memory_space<vmem>>) attributes {dimension_semantics = [#tpu.dimension_semantics<parallel>], iteration_bounds = array<i64: 2>, scalar_prefetch = 0 : i64, scratch_operands = 0 : i64, tpu.core_type = #tpu.core_type<tc>, window_params = [{transform_indices = @transform_0, window_bounds = array<i64: 64, 128>}, {pipeline_mode = #tpu.pipeline_mode<synchronous>, transform_indices = @transform_1, window_bounds = array<i64: 128, 128>}, {pipeline_mode = #tpu.pipeline_mode<synchronous>, transform_indices = @transform_2, window_bounds = array<i64: 2, 128>}, {transform_indices = @transform_3, window_bounds = array<i64: 64, 128>}]} {
    %c0 = arith.constant 0 : index
    %c0_0 = arith.constant 0 : index
    %0 = vector.load %arg1[%c0, %c0_0] : memref<64x128xbf16, #tpu.memory_space<vmem>>, vector<64x128xbf16>
    %c0_1 = arith.constant 0 : index
    %c0_2 = arith.constant 0 : index
    %1 = vector.load %arg2[%c0_1, %c0_2] : memref<128x128xbf16, #tpu.memory_space<vmem>>, vector<128x128xbf16>
    %cst = arith.constant dense<0.000000e+00> : vector<64x128xf32>
    %2 = tpu.matmul %0, %1, %cst {dimension_numbers = #tpu.dot_dimension_numbers<[1], [0], [0], [1], [0, 0, 1, 1], [], []>} : vector<64x128xbf16>, vector<128x128xbf16>, vector<64x128xf32> -> vector<64x128xf32>
    %c0_3 = arith.constant 0 : index
    %c0_4 = arith.constant 0 : index
    %3 = vector.load %arg3[%c0_3, %c0_4] : memref<2x128xf32, #tpu.memory_space<vmem>>, vector<1x128xf32>
    %4 = vector.broadcast %3 : vector<1x128xf32> to vector<64x128xf32>
    %5 = arith.mulf %2, %4 : vector<64x128xf32>
    %c1 = arith.constant 1 : index
    %c0_5 = arith.constant 0 : index
    %6 = vector.load %arg3[%c1, %c0_5] : memref<2x128xf32, #tpu.memory_space<vmem>>, vector<1x128xf32>
    %7 = vector.broadcast %6 : vector<1x128xf32> to vector<64x128xf32>
    %8 = arith.addf %5, %7 : vector<64x128xf32>
    %cst_6 = arith.constant 0.000000e+00 : f32
    %9 = vector.broadcast %cst_6 : f32 to vector<64x128xf32>
    %10 = arith.maximumf %8, %9 : vector<64x128xf32>
    %11 = arith.truncf %10 : vector<64x128xf32> to vector<64x128xbf16>
    %c0_7 = arith.constant 0 : index
    %c0_8 = arith.constant 0 : index
    %12 = vector.load %arg4[%c0_7, %c0_8] : memref<64x128xbf16, #tpu.memory_space<vmem>>, vector<64x128xbf16>
    tpu.vector_store %arg4[%c0_7, %c0_8], %11 {strides = array<i32>} : memref<64x128xbf16, #tpu.memory_space<vmem>>, vector<64x128xbf16>,
    return
  }
  func.func @transform_0(%arg0: i32) -> (i32, i32) {
    %c0_i32 = arith.constant 0 : i32
    %c0_i32_0 = arith.constant 0 : i32
    return %arg0, %c0_i32 : i32, i32
  }
  func.func @transform_1(%arg0: i32) -> (i32, i32) {
    %c0_i32 = arith.constant 0 : i32
    %c0_i32_0 = arith.constant 0 : i32
    %c0_i32_1 = arith.constant 0 : i32
    return %c0_i32, %c0_i32_0 : i32, i32
  }
  func.func @transform_2(%arg0: i32) -> (i32, i32) {
    %c0_i32 = arith.constant 0 : i32
    %c0_i32_0 = arith.constant 0 : i32
    %c0_i32_1 = arith.constant 0 : i32
    return %c0_i32, %c0_i32_0 : i32, i32
  }
  func.func @transform_3(%arg0: i32) -> (i32, i32) {
    %c0_i32 = arith.constant 0 : i32
    %c0_i32_0 = arith.constant 0 : i32
    return %arg0, %c0_i32 : i32, i32
  }
}

module attributes {stable_mosaic.version = 11 : i64} {
  func.func @_conv_mm_kernel(%arg0: i32, %arg1: memref<16x384xbf16, #tpu.memory_space<vmem>>, %arg2: memref<384x128xbf16, #tpu.memory_space<vmem>>, %arg3: memref<2x128xf32, #tpu.memory_space<vmem>>, %arg4: memref<16x128xbf16, #tpu.memory_space<vmem>>) attributes {dimension_semantics = [#tpu.dimension_semantics<parallel>], iteration_bounds = array<i64: 2>, scalar_prefetch = 0 : i64, scratch_operands = 0 : i64, tpu.core_type = #tpu.core_type<tc>, window_params = [{transform_indices = @transform_0, window_bounds = array<i64: 16, 384>}, {pipeline_mode = #tpu.pipeline_mode<synchronous>, transform_indices = @transform_1, window_bounds = array<i64: 384, 128>}, {pipeline_mode = #tpu.pipeline_mode<synchronous>, transform_indices = @transform_2, window_bounds = array<i64: 2, 128>}, {transform_indices = @transform_3, window_bounds = array<i64: 16, 128>}]} {
    %c0 = arith.constant 0 : index
    %c0_0 = arith.constant 0 : index
    %0 = vector.load %arg1[%c0, %c0_0] : memref<16x384xbf16, #tpu.memory_space<vmem>>, vector<16x384xbf16>
    %c0_1 = arith.constant 0 : index
    %c0_2 = arith.constant 0 : index
    %1 = vector.load %arg2[%c0_1, %c0_2] : memref<384x128xbf16, #tpu.memory_space<vmem>>, vector<384x128xbf16>
    %cst = arith.constant dense<0.000000e+00> : vector<16x128xf32>
    %2 = tpu.matmul %0, %1, %cst {dimension_numbers = #tpu.dot_dimension_numbers<[1], [0], [0], [1], [0, 0, 1, 1], [], []>} : vector<16x384xbf16>, vector<384x128xbf16>, vector<16x128xf32> -> vector<16x128xf32>
    %c0_3 = arith.constant 0 : index
    %c0_4 = arith.constant 0 : index
    %3 = vector.load %arg3[%c0_3, %c0_4] : memref<2x128xf32, #tpu.memory_space<vmem>>, vector<1x128xf32>
    %4 = vector.broadcast %3 : vector<1x128xf32> to vector<16x128xf32>
    %5 = arith.mulf %2, %4 : vector<16x128xf32>
    %c1 = arith.constant 1 : index
    %c0_5 = arith.constant 0 : index
    %6 = vector.load %arg3[%c1, %c0_5] : memref<2x128xf32, #tpu.memory_space<vmem>>, vector<1x128xf32>
    %7 = vector.broadcast %6 : vector<1x128xf32> to vector<16x128xf32>
    %8 = arith.addf %5, %7 : vector<16x128xf32>
    %cst_6 = arith.constant 0.000000e+00 : f32
    %9 = vector.broadcast %cst_6 : f32 to vector<16x128xf32>
    %10 = arith.maximumf %8, %9 : vector<16x128xf32>
    %11 = arith.truncf %10 : vector<16x128xf32> to vector<16x128xbf16>
    %c0_7 = arith.constant 0 : index
    %c0_8 = arith.constant 0 : index
    %12 = vector.load %arg4[%c0_7, %c0_8] : memref<16x128xbf16, #tpu.memory_space<vmem>>, vector<16x128xbf16>
    tpu.vector_store %arg4[%c0_7, %c0_8], %11 {strides = array<i32>} : memref<16x128xbf16, #tpu.memory_space<vmem>>, vector<16x128xbf16>,
    return
  }
  func.func @transform_0(%arg0: i32) -> (i32, i32) {
    %c0_i32 = arith.constant 0 : i32
    %c0_i32_0 = arith.constant 0 : i32
    return %arg0, %c0_i32 : i32, i32
  }
  func.func @transform_1(%arg0: i32) -> (i32, i32) {
    %c0_i32 = arith.constant 0 : i32
    %c0_i32_0 = arith.constant 0 : i32
    %c0_i32_1 = arith.constant 0 : i32
    return %c0_i32, %c0_i32_0 : i32, i32
  }
  func.func @transform_2(%arg0: i32) -> (i32, i32) {
    %c0_i32 = arith.constant 0 : i32
    %c0_i32_0 = arith.constant 0 : i32
    %c0_i32_1 = arith.constant 0 : i32
    return %c0_i32, %c0_i32_0 : i32, i32
  }
  func.func @transform_3(%arg0: i32) -> (i32, i32) {
    %c0_i32 = arith.constant 0 : i32
    %c0_i32_0 = arith.constant 0 : i32
    return %arg0, %c0_i32 : i32, i32
  }
}

module attributes {stable_mosaic.version = 11 : i64} {
  func.func @_tail_kernel(%arg0: memref<8x896xbf16, #tpu.memory_space<vmem>>, %arg1: memref<896x256xbf16, #tpu.memory_space<vmem>>, %arg2: memref<2x256xf32, #tpu.memory_space<vmem>>, %arg3: memref<256x128xbf16, #tpu.memory_space<vmem>>, %arg4: memref<2x128xf32, #tpu.memory_space<vmem>>, %arg5: memref<128x128xbf16, #tpu.memory_space<vmem>>, %arg6: memref<2x128xf32, #tpu.memory_space<vmem>>, %arg7: memref<128x128xbf16, #tpu.memory_space<vmem>>, %arg8: memref<2x128xf32, #tpu.memory_space<vmem>>, %arg9: memref<128x1024xbf16, #tpu.memory_space<vmem>>, %arg10: memref<1x1024xf32, #tpu.memory_space<vmem>>, %arg11: memref<1024x128xbf16, #tpu.memory_space<vmem>>, %arg12: memref<1x128xf32, #tpu.memory_space<vmem>>, %arg13: memref<8x128xf32, #tpu.memory_space<vmem>>) attributes {dimension_semantics = [], scalar_prefetch = 0 : i64, scratch_operands = 0 : i64, tpu.core_type = #tpu.core_type<tc>} {
    %c0 = arith.constant 0 : index
    %c0_0 = arith.constant 0 : index
    %0 = vector.load %arg0[%c0, %c0_0] : memref<8x896xbf16, #tpu.memory_space<vmem>>, vector<8x896xbf16>
    %c0_1 = arith.constant 0 : index
    %c0_2 = arith.constant 0 : index
    %1 = vector.load %arg1[%c0_1, %c0_2] : memref<896x256xbf16, #tpu.memory_space<vmem>>, vector<896x256xbf16>
    %cst = arith.constant dense<0.000000e+00> : vector<8x256xf32>
    %2 = tpu.matmul %0, %1, %cst {dimension_numbers = #tpu.dot_dimension_numbers<[1], [0], [0], [1], [0, 0, 1, 1], [], []>} : vector<8x896xbf16>, vector<896x256xbf16>, vector<8x256xf32> -> vector<8x256xf32>
    %c0_3 = arith.constant 0 : index
    %c0_4 = arith.constant 0 : index
    %3 = vector.load %arg2[%c0_3, %c0_4] : memref<2x256xf32, #tpu.memory_space<vmem>>, vector<1x256xf32>
    %4 = vector.broadcast %3 : vector<1x256xf32> to vector<8x256xf32>
    %5 = arith.mulf %2, %4 : vector<8x256xf32>
    %c1 = arith.constant 1 : index
    %c0_5 = arith.constant 0 : index
    %6 = vector.load %arg2[%c1, %c0_5] : memref<2x256xf32, #tpu.memory_space<vmem>>, vector<1x256xf32>
    %7 = vector.broadcast %6 : vector<1x256xf32> to vector<8x256xf32>
    %8 = arith.addf %5, %7 : vector<8x256xf32>
    %cst_6 = arith.constant 0.000000e+00 : f32
    %9 = vector.broadcast %cst_6 : f32 to vector<8x256xf32>
    %10 = arith.maximumf %8, %9 : vector<8x256xf32>
    %11 = arith.truncf %10 : vector<8x256xf32> to vector<8x256xbf16>
    %c0_7 = arith.constant 0 : index
    %c0_8 = arith.constant 0 : index
    %12 = vector.load %arg3[%c0_7, %c0_8] : memref<256x128xbf16, #tpu.memory_space<vmem>>, vector<256x128xbf16>
    %cst_9 = arith.constant dense<0.000000e+00> : vector<8x128xf32>
    %13 = tpu.matmul %11, %12, %cst_9 {dimension_numbers = #tpu.dot_dimension_numbers<[1], [0], [0], [1], [0, 0, 1, 1], [], []>} : vector<8x256xbf16>, vector<256x128xbf16>, vector<8x128xf32> -> vector<8x128xf32>
    %c0_10 = arith.constant 0 : index
    %c0_11 = arith.constant 0 : index
    %14 = vector.load %arg4[%c0_10, %c0_11] : memref<2x128xf32, #tpu.memory_space<vmem>>, vector<1x128xf32>
    %15 = vector.broadcast %14 : vector<1x128xf32> to vector<8x128xf32>
    %16 = arith.mulf %13, %15 : vector<8x128xf32>
    %c1_12 = arith.constant 1 : index
    %c0_13 = arith.constant 0 : index
    %17 = vector.load %arg4[%c1_12, %c0_13] : memref<2x128xf32, #tpu.memory_space<vmem>>, vector<1x128xf32>
    %18 = vector.broadcast %17 : vector<1x128xf32> to vector<8x128xf32>
    %19 = arith.addf %16, %18 : vector<8x128xf32>
    %cst_14 = arith.constant 0.000000e+00 : f32
    %20 = vector.broadcast %cst_14 : f32 to vector<8x128xf32>
    %21 = arith.maximumf %19, %20 : vector<8x128xf32>
    %22 = arith.truncf %21 : vector<8x128xf32> to vector<8x128xbf16>
    %c0_15 = arith.constant 0 : index
    %c0_16 = arith.constant 0 : index
    %23 = vector.load %arg5[%c0_15, %c0_16] : memref<128x128xbf16, #tpu.memory_space<vmem>>, vector<128x128xbf16>
    %cst_17 = arith.constant dense<0.000000e+00> : vector<8x128xf32>
    %24 = tpu.matmul %22, %23, %cst_17 {dimension_numbers = #tpu.dot_dimension_numbers<[1], [0], [0], [1], [0, 0, 1, 1], [], []>} : vector<8x128xbf16>, vector<128x128xbf16>, vector<8x128xf32> -> vector<8x128xf32>
    %c0_18 = arith.constant 0 : index
    %c0_19 = arith.constant 0 : index
    %25 = vector.load %arg6[%c0_18, %c0_19] : memref<2x128xf32, #tpu.memory_space<vmem>>, vector<1x128xf32>
    %26 = vector.broadcast %25 : vector<1x128xf32> to vector<8x128xf32>
    %27 = arith.mulf %24, %26 : vector<8x128xf32>
    %c1_20 = arith.constant 1 : index
    %c0_21 = arith.constant 0 : index
    %28 = vector.load %arg6[%c1_20, %c0_21] : memref<2x128xf32, #tpu.memory_space<vmem>>, vector<1x128xf32>
    %29 = vector.broadcast %28 : vector<1x128xf32> to vector<8x128xf32>
    %30 = arith.addf %27, %29 : vector<8x128xf32>
    %cst_22 = arith.constant 0.000000e+00 : f32
    %31 = vector.broadcast %cst_22 : f32 to vector<8x128xf32>
    %32 = arith.maximumf %30, %31 : vector<8x128xf32>
    %33 = arith.truncf %32 : vector<8x128xf32> to vector<8x128xbf16>
    %c0_23 = arith.constant 0 : index
    %c0_24 = arith.constant 0 : index
    %34 = vector.load %arg7[%c0_23, %c0_24] : memref<128x128xbf16, #tpu.memory_space<vmem>>, vector<128x128xbf16>
    %cst_25 = arith.constant dense<0.000000e+00> : vector<8x128xf32>
    %35 = tpu.matmul %33, %34, %cst_25 {dimension_numbers = #tpu.dot_dimension_numbers<[1], [0], [0], [1], [0, 0, 1, 1], [], []>} : vector<8x128xbf16>, vector<128x128xbf16>, vector<8x128xf32> -> vector<8x128xf32>
    %c0_26 = arith.constant 0 : index
    %c0_27 = arith.constant 0 : index
    %36 = vector.load %arg8[%c0_26, %c0_27] : memref<2x128xf32, #tpu.memory_space<vmem>>, vector<1x128xf32>
    %37 = vector.broadcast %36 : vector<1x128xf32> to vector<8x128xf32>
    %38 = arith.mulf %35, %37 : vector<8x128xf32>
    %c1_28 = arith.constant 1 : index
    %c0_29 = arith.constant 0 : index
    %39 = vector.load %arg8[%c1_28, %c0_29] : memref<2x128xf32, #tpu.memory_space<vmem>>, vector<1x128xf32>
    %40 = vector.broadcast %39 : vector<1x128xf32> to vector<8x128xf32>
    %41 = arith.addf %38, %40 : vector<8x128xf32>
    %cst_30 = arith.constant 0.000000e+00 : f32
    %42 = vector.broadcast %cst_30 : f32 to vector<8x128xf32>
    %43 = arith.maximumf %41, %42 : vector<8x128xf32>
    %44 = arith.truncf %43 : vector<8x128xf32> to vector<8x128xbf16>
    %c0_31 = arith.constant 0 : index
    %c0_32 = arith.constant 0 : index
    %45 = vector.load %arg9[%c0_31, %c0_32] : memref<128x1024xbf16, #tpu.memory_space<vmem>>, vector<128x1024xbf16>
    %cst_33 = arith.constant dense<0.000000e+00> : vector<8x1024xf32>
    %46 = tpu.matmul %44, %45, %cst_33 {dimension_numbers = #tpu.dot_dimension_numbers<[1], [0], [0], [1], [0, 0, 1, 1], [], []>} : vector<8x128xbf16>, vector<128x1024xbf16>, vector<8x1024xf32> -> vector<8x1024xf32>
    %c0_34 = arith.constant 0 : index
    %c0_35 = arith.constant 0 : index
    %47 = vector.load %arg10[%c0_34, %c0_35] : memref<1x1024xf32, #tpu.memory_space<vmem>>, vector<1x1024xf32>
    %48 = vector.broadcast %47 : vector<1x1024xf32> to vector<8x1024xf32>
    %49 = arith.addf %46, %48 : vector<8x1024xf32>
    %cst_36 = arith.constant 0.000000e+00 : f32
    %50 = vector.broadcast %cst_36 : f32 to vector<8x1024xf32>
    %51 = arith.maximumf %49, %50 : vector<8x1024xf32>
    %52 = arith.truncf %51 : vector<8x1024xf32> to vector<8x1024xbf16>
    %c0_37 = arith.constant 0 : index
    %c0_38 = arith.constant 0 : index
    %53 = vector.load %arg11[%c0_37, %c0_38] : memref<1024x128xbf16, #tpu.memory_space<vmem>>, vector<1024x128xbf16>
    %cst_39 = arith.constant dense<0.000000e+00> : vector<8x128xf32>
    %54 = tpu.matmul %52, %53, %cst_39 {dimension_numbers = #tpu.dot_dimension_numbers<[1], [0], [0], [1], [0, 0, 1, 1], [], []>} : vector<8x1024xbf16>, vector<1024x128xbf16>, vector<8x128xf32> -> vector<8x128xf32>
    %c0_40 = arith.constant 0 : index
    %c0_41 = arith.constant 0 : index
    %55 = vector.load %arg12[%c0_40, %c0_41] : memref<1x128xf32, #tpu.memory_space<vmem>>, vector<1x128xf32>
    %56 = vector.broadcast %55 : vector<1x128xf32> to vector<8x128xf32>
    %57 = arith.addf %54, %56 : vector<8x128xf32>
    %c0_42 = arith.constant 0 : index
    %c0_43 = arith.constant 0 : index
    %58 = vector.load %arg13[%c0_42, %c0_43] : memref<8x128xf32, #tpu.memory_space<vmem>>, vector<8x128xf32>
    tpu.vector_store %arg13[%c0_42, %c0_43], %57 {strides = array<i32>} : memref<8x128xf32, #tpu.memory_space<vmem>>, vector<8x128xf32>,
    return
  }
}

</mosaic_0001>

<bundles_post_ra>
// kernel: mask_cnn_forward.3
= control target key start
LH: loop header
LB: loop body
LE: loop exit
PB: predicated region body
PF: predicated region fallthrough
CT: control target
= control target key end

     0   :  { %s555_s12 = smov 0   ;;  %s609_s0 = inlined_call_operand.vmem [shape: bf16[128,128], index: 0, kind: input, shape index: {}]   ;;  %s610_s1 = inlined_call_operand.vmem [shape: bf16[128,128], index: 1, kind: input, shape index: {}]   ;;  %s611_s2 = inlined_call_operand.vmem [shape: f32[2,128], index: 2, kind: input, shape index: {}]   ;;  %s612_s3 = inlined_call_operand.vmem [shape: bf16[128,128], index: 3, kind: output, shape index: {}]  }
   0x1 LB: > { %s399_s13 = sadd.s32 4294967295, %s533_s12   ;;  %p403_p0 = scmp.ge.s32.totalorder %s533_s12, 1  ;;  %s533_s12 = sphi %s555_s12, %s13_s12  }
   0x2   : > { %p138_p1 = scmp.lt.s32.totalorder %s533_s12, 3 }
   0x4   : > { %p139_p2 = pnand %p403_p0, %p138_p1 }
   0x5   : > { %s404_s22 = sshll.u32 (!%p139_p2), %s399_s13, 3 }
   0x6   : > { %142 = sbr.rel (%p139_p2) target bundleno = 194 (0xc2), region = 32  ;;  %p163_p3 = scmp.lt.s32.totalorder (!%p139_p2), %s404_s22, 15 }
   0xb   : > { %v469_v0 = vld [vmem:[%s610_s1 + $0x38] sm:$0xff]  ;;  %v468_v1 = vld [vmem:[%s610_s1 + $0x30] sm:$0xff]  ;;  %v467_v2 = vld [vmem:[%s610_s1 + $0x28] sm:$0xff]  ;;  %s614_s22 = smov (!%p163_p3, %s404_s22), 15 }
   0xc   : > { %270 = vmatpush.bf16.msra.mxu0 %v469_v0  ;;  %493 = vmatpush.bf16.msra.mxu1 %v469_v0  ;;  %v466_v3 = vld [vmem:[%s610_s1 + $0x20] sm:$0xff]  ;;  %v465_v4 = vld [vmem:[%s610_s1 + $0x18] sm:$0xff]  ;;  %v464_v5 = vld [vmem:[%s610_s1 + $0x10] sm:$0xff]  ;;  %s405_s29 = sshll.u32 %s614_s22, 2 }
   0xd   : > { %494 = vmatpush.bf16.msra.mxu2 %v469_v0  ;;  %495 = vmatpush.bf16.msra.mxu3 %v469_v0  ;;  %v463_v6 = vld [vmem:[%s610_s1 + $0x8] sm:$0xff]  ;;  %v462_v7 = vld [vmem:[%s610_s1] sm:$0xff]  ;;  %s166_s7 = scalar_lea.vmem %s609_s0, %s405_s29  ;;  %s172_s15 = scalar_lea.vmem %s612_s3, %s405_s29 }
   0xe   : > { %v458_v8 = vld [vmem:[%s166_s7] sm:$0xff]  ;;  %v459_v9 = vld [vmem:[%s166_s7 + $0x8] sm:$0xff]  ;;  %v460_v10 = vld [vmem:[%s166_s7 + $0x10] sm:$0xff] }
   0xf   : > { %v461_v11 = vld [vmem:[%s166_s7 + $0x18] sm:$0xff]  ;;  %v525_v14 = vld [vmem:[%s611_s2] ss:$0 sm:$0xff]  ;;  %v526_v16 = vld [vmem:[%s611_s2 + $0x1] ss:$0 sm:$0xff] }
  0x10   : > { %271 = vmatpush.bf16.msra.mxu0 %v468_v1  ;;  %496 = vmatpush.bf16.msra.mxu1 %v468_v1 }
  0x11   : > { %497 = vmatpush.bf16.msra.mxu2 %v468_v1  ;;  %498 = vmatpush.bf16.msra.mxu3 %v468_v1 }
  0x14   : > { %272 = vmatpush.bf16.msra.mxu0 %v467_v2  ;;  %499 = vmatpush.bf16.msra.mxu1 %v467_v2 }
  0x15   : > { %500 = vmatpush.bf16.msra.mxu2 %v467_v2  ;;  %501 = vmatpush.bf16.msra.mxu3 %v467_v2 }
  0x18   : > { %273 = vmatpush.bf16.msra.mxu0 %v466_v3  ;;  %502 = vmatpush.bf16.msra.mxu1 %v466_v3 }
  0x19   : > { %503 = vmatpush.bf16.msra.mxu2 %v466_v3  ;;  %504 = vmatpush.bf16.msra.mxu3 %v466_v3 }
  0x1c   : > { %274 = vmatpush.bf16.msra.mxu0 %v465_v4  ;;  %505 = vmatpush.bf16.msra.mxu1 %v465_v4 }
  0x1d   : > { %506 = vmatpush.bf16.msra.mxu2 %v465_v4  ;;  %507 = vmatpush.bf16.msra.mxu3 %v465_v4 }
  0x20   : > { %275 = vmatpush.bf16.msra.mxu0 %v464_v5  ;;  %508 = vmatpush.bf16.msra.mxu1 %v464_v5 }
  0x21   : > { %509 = vmatpush.bf16.msra.mxu2 %v464_v5  ;;  %510 = vmatpush.bf16.msra.mxu3 %v464_v5 }
  0x24   : > { %276 = vmatpush.bf16.msra.mxu0 %v463_v6  ;;  %511 = vmatpush.bf16.msra.mxu1 %v463_v6 }
  0x25   : > { %512 = vmatpush.bf16.msra.mxu2 %v463_v6  ;;  %513 = vmatpush.bf16.msra.mxu3 %v463_v6 }
  0x28   : > { %277 = vmatpush.bf16.msra.mxu0 %v462_v7  ;;  %514 = vmatpush.bf16.msra.mxu1 %v462_v7 }
  0x29   : > { %515 = vmatpush.bf16.msra.mxu2 %v462_v7  ;;  %516 = vmatpush.bf16.msra.mxu3 %v462_v7 }
  0x2b   : > { %278 = vmatmul.bf16.vlgmr.msra.gmra.mxu0 %v458_v8  ;;  %283 = vmatmul.bf16.vlgmr.msra.gmra.mxu1 %v459_v9 }
  0x2c   : > { %288 = vmatmul.bf16.vlgmr.msra.gmra.mxu2 %v460_v10  ;;  %293 = vmatmul.bf16.vlgmr.msra.gmra.mxu3 %v461_v11 }
  0xa8   : > { %v279_v12 = vpop.f32.mrf.mxu0  ;;  %v284_v13 = vpop.f32.mrf.mxu1 }
  0xa9   : > { %v301_v15 = vmul.f32 %v525_v14, %v279_v12  ;;  %v303_v17 = vmul.f32 %v525_v14, %v284_v13 }
  0xab   : > { %v311_v22 = vadd.f32 %v526_v16, %v301_v15  ;;  %v313_v23 = vadd.f32 %v526_v16, %v303_v17 }
  0xad   : > { %v319_v30 = vmax.f32 %v311_v22, 0.0  ;;  %v321_v31 = vmax.f32 %v313_v23, 0.0 }
  0xaf   : > { %v289_v18 = vpop.f32.mrf.mxu2  ;;  %v294_v19 = vpop.f32.mrf.mxu3 }
  0xb0   : > { %v281_v20 = vpop.f32.mrf.mxu0  ;;  %v286_v21 = vpop.f32.mrf.mxu1  ;;  %v305_v28 = vmul.f32 %v525_v14, %v289_v18  ;;  %v307_v29 = vmul.f32 %v525_v14, %v294_v19 }
  0xb1   : > { %v302_v24 = vmul.f32 %v525_v14, %v281_v20  ;;  %v304_v25 = vmul.f32 %v525_v14, %v286_v21 }
  0xb2   : > { %v315_v38 = vadd.f32 %v526_v16, %v305_v28  ;;  %v317_v39 = vadd.f32 %v526_v16, %v307_v29 }
  0xb3   : > { %v312_v26 = vadd.f32 %v526_v16, %v302_v24  ;;  %v314_v27 = vadd.f32 %v526_v16, %v304_v25 }
  0xb4   : > { %v323_v44 = vmax.f32 %v315_v38, 0.0  ;;  %v325_v45 = vmax.f32 %v317_v39, 0.0 }
  0xb5   : > { %v320_v32 = vmax.f32 %v312_v26, 0.0  ;;  %v322_v33 = vmax.f32 %v314_v27, 0.0 }
  0xb7   : > { %v473_v34 = vpack.c.bf16 %v320_v32, %v319_v30  ;;  %v478_v35 = vpack.c.bf16 %v322_v33, %v321_v31  ;;  %v291_v36 = vpop.f32.mrf.mxu2  ;;  %v296_v37 = vpop.f32.mrf.mxu3 }
  0xb8   : > { %v306_v40 = vmul.f32 %v525_v14, %v291_v36  ;;  %v308_v41 = vmul.f32 %v525_v14, %v296_v37 }
  0xb9   : > { %474 = vst [vmem:[%s172_s15] sm:$0xff] %v473_v34  }
  0xba   : > { %490 = vst [vmem:[%s172_s15 + $0x8] sm:$0xff] %v478_v35   ;;  %v316_v42 = vadd.f32 %v526_v16, %v306_v40  ;;  %v318_v43 = vadd.f32 %v526_v16, %v308_v41 }
  0xbc   : > { %v324_v46 = vmax.f32 %v316_v42, 0.0  ;;  %v326_v47 = vmax.f32 %v318_v43, 0.0 }
  0xbe   : > { %v483_v48 = vpack.c.bf16 %v324_v46, %v323_v44  ;;  %v488_v49 = vpack.c.bf16 %v326_v47, %v325_v45 }
  0xc0   : > { %491 = vst [vmem:[%s172_s15 + $0x10] sm:$0xff] %v483_v48  }
  0xc1   : > { %492 = vst [vmem:[%s172_s15 + $0x18] sm:$0xff] %v488_v49  }
  0xc2 PF: > { %s13_s12 = sadd.s32 1, %s533_s12  }
  0xc3   : > { %p10_p4 = scmp.ge.s32.totalorder %s13_s12, 4  }
  0xc5   :  { %12 = sbr.rel (!%p10_p4) target bundleno = 1 (0x1), region = 62 }

// kernel: mask_cnn_forward.4
= control target key start
LH: loop header
LB: loop body
LE: loop exit
PB: predicated region body
PF: predicated region fallthrough
CT: control target
= control target key end

     0   :  { %s691_s12 = smov 0   ;;  %s790_s0 = inlined_call_operand.vmem [shape: bf16[32,384], index: 0, kind: input, shape index: {}]   ;;  %s791_s1 = inlined_call_operand.vmem [shape: bf16[384,128], index: 1, kind: input, shape index: {}]   ;;  %s792_s2 = inlined_call_operand.vmem [shape: f32[2,128], index: 2, kind: input, shape index: {}]   ;;  %s793_s3 = inlined_call_operand.vmem [shape: bf16[32,128], index: 3, kind: output, shape index: {}]  }
   0x1 LB: > { %s501_s13 = sadd.s32 4294967295, %s669_s12   ;;  %p505_p0 = scmp.ge.s32.totalorder %s669_s12, 1  ;;  %s669_s12 = sphi %s691_s12, %s13_s12  }
   0x2   : > { %p139_p1 = scmp.lt.s32.totalorder %s669_s12, 3 }
   0x4   : > { %p140_p2 = pnand %p505_p0, %p139_p1 }
   0x5   : > { %s506_s5 = sshll.u32 (!%p140_p2), %s501_s13, 1 }
   0x6   : > { %143 = sbr.rel (%p140_p2) target bundleno = 196 (0xc4), region = 32  ;;  %p165_p3 = scmp.lt.s32.totalorder (!%p140_p2), %s506_s5, 3 }
   0xb   : > { %v630_v0 = vld [vmem:[%s791_s1 + $0x38] sm:$0xff]  ;;  %v629_v3 = vld [vmem:[%s791_s1 + $0x30] sm:$0xff]  ;;  %v628_v6 = vld [vmem:[%s791_s1 + $0x28] sm:$0xff]  ;;  %s795_s5 = smov (!%p165_p3, %s506_s5), 3 }
   0xc   : > { %v638_v1 = vld [vmem:[%s791_s1 + $0x78] sm:$0xff]  ;;  %389 = vmatpush.bf16.msra.mxu0 %v630_v0  ;;  %v637_v4 = vld [vmem:[%s791_s1 + $0x70] sm:$0xff]  ;;  %v636_v7 = vld [vmem:[%s791_s1 + $0x68] sm:$0xff]  ;;  %s652_s23 = smul.u32 12, %s795_s5  ;;  %s509_s20 = sshll.u32 %s795_s5, 2 }
   0xd   : > { %v646_v2 = vld [vmem:[%s791_s1 + $0xb8] sm:$0xff]  ;;  %403 = vmatpush.bf16.msra.mxu1 %v638_v1  ;;  %v645_v5 = vld [vmem:[%s791_s1 + $0xb0] sm:$0xff]  ;;  %v644_v8 = vld [vmem:[%s791_s1 + $0xa8] sm:$0xff] }
   0xe   : > { %417 = vmatpush.bf16.msra.mxu2 %v646_v2  ;;  %v627_v9 = vld [vmem:[%s791_s1 + $0x20] sm:$0xff]  ;;  %v626_v12 = vld [vmem:[%s791_s1 + $0x18] sm:$0xff]  ;;  %v625_v15 = vld [vmem:[%s791_s1 + $0x10] sm:$0xff]  ;;  %s169_s6 = scalar_lea.vmem %s790_s0, %s652_s23  ;;  %s175_s23 = scalar_lea.vmem %s793_s3, %s509_s20 }
   0xf   : > { %v635_v10 = vld [vmem:[%s791_s1 + $0x60] sm:$0xff]  ;;  %v634_v13 = vld [vmem:[%s791_s1 + $0x58] sm:$0xff]  ;;  %v633_v16 = vld [vmem:[%s791_s1 + $0x50] sm:$0xff] }
  0x10   : > { %390 = vmatpush.bf16.msra.mxu0 %v629_v3  ;;  %v643_v11 = vld [vmem:[%s791_s1 + $0xa0] sm:$0xff]  ;;  %v642_v14 = vld [vmem:[%s791_s1 + $0x98] sm:$0xff]  ;;  %v641_v17 = vld [vmem:[%s791_s1 + $0x90] sm:$0xff] }
  0x11   : > { %404 = vmatpush.bf16.msra.mxu1 %v637_v4  ;;  %v624_v18 = vld [vmem:[%s791_s1 + $0x8] sm:$0xff]  ;;  %v623_v21 = vld [vmem:[%s791_s1] sm:$0xff]  ;;  %v514_v26 = vld [vmem:[%s169_s6 + $0xc] sm:$0xf0] }
  0x12   : > { %418 = vmatpush.bf16.msra.mxu2 %v645_v5  ;;  %v632_v19 = vld [vmem:[%s791_s1 + $0x48] sm:$0xff]  ;;  %v631_v22 = vld [vmem:[%s791_s1 + $0x40] sm:$0xff]  ;;  %v622_v29 = vld [vmem:[%s169_s6 + $0x10] sm:$0xf0] }
  0x13   : > { %v640_v20 = vld [vmem:[%s791_s1 + $0x88] sm:$0xff]  ;;  %v512_v23 = vld [vmem:[%s169_s6] sm:$0xf]  ;;  %v620_v25 = vld [vmem:[%s169_s6 + $0x4] sm:$0xf] }
  0x14   : > { %391 = vmatpush.bf16.msra.mxu0 %v628_v6  ;;  %v621_v24 = vld [vmem:[%s169_s6 + $0x8] sm:$0xf0]  ;;  %v639_v27 = vld [vmem:[%s791_s1 + $0x80] sm:$0xff]  ;;  %v520_v28 = vld [vmem:[%s169_s6 + $0x8] sm:$0xf]  ;;  %v517_v31 = vor.u32 %v620_v25, %v514_v26 }
  0x15   : > { %405 = vmatpush.bf16.msra.mxu1 %v636_v7  ;;  %v513_v30 = vor.u32 %v621_v24, %v512_v23  ;;  %v521_v32 = vor.u32 %v622_v29, %v520_v28  ;;  %v661_v38 = vld [vmem:[%s792_s2] ss:$0 sm:$0xff]  ;;  %v662_v42 = vld [vmem:[%s792_s2 + $0x1] ss:$0 sm:$0xff] }
  0x16   : > { %419 = vmatpush.bf16.msra.mxu2 %v644_v8 }
  0x18   : > { %392 = vmatpush.bf16.msra.mxu0 %v627_v9 }
  0x19   : > { %406 = vmatpush.bf16.msra.mxu1 %v635_v10 }
  0x1a   : > { %420 = vmatpush.bf16.msra.mxu2 %v643_v11 }
  0x1c   : > { %393 = vmatpush.bf16.msra.mxu0 %v626_v12 }
  0x1d   : > { %407 = vmatpush.bf16.msra.mxu1 %v634_v13 }
  0x1e   : > { %421 = vmatpush.bf16.msra.mxu2 %v642_v14 }
  0x20   : > { %394 = vmatpush.bf16.msra.mxu0 %v625_v15 }
  0x21   : > { %408 = vmatpush.bf16.msra.mxu1 %v633_v16 }
  0x22   : > { %422 = vmatpush.bf16.msra.mxu2 %v641_v17 }
  0x24   : > { %395 = vmatpush.bf16.msra.mxu0 %v624_v18 }
  0x25   : > { %409 = vmatpush.bf16.msra.mxu1 %v632_v19 }
  0x26   : > { %423 = vmatpush.bf16.msra.mxu2 %v640_v20 }
  0x28   : > { %396 = vmatpush.bf16.msra.mxu0 %v623_v21 }
  0x29   : > { %410 = vmatpush.bf16.msra.mxu1 %v631_v22 }
  0x2a   : > { %424 = vmatpush.bf16.msra.mxu2 %v639_v27 }
  0x2b   : > { %397 = vmatmul.bf16.vlgmr.msra.gmra.mxu0 %v513_v30 }
  0x2c   : > { %411 = vmatmul.bf16.vlgmr.msra.gmra.mxu1 %v517_v31 }
  0x2d   : > { %425 = vmatmul.bf16.vlgmr.msra.gmra.mxu2 %v521_v32 }
  0xa8   : > { %v398_v33 = vpop.f32.mrf.mxu0 }
  0xa9   : > { %v412_v34 = vpop.f32.mrf.mxu1 }
  0xaa   : > { %v413_v35 = vadd.f32 %v412_v34, %v398_v33 }
  0xb0   : > { %v426_v36 = vpop.f32.mrf.mxu2  ;;  %v400_v39 = vpop.f32.mrf.mxu0 }
  0xb1   : > { %v427_v37 = vadd.f32 %v426_v36, %v413_v35  ;;  %v414_v40 = vpop.f32.mrf.mxu1 }
  0xb2   : > { %v415_v43 = vadd.f32 %v414_v40, %v400_v39 }
  0xb3   : > { %v433_v41 = vmul.f32 %v661_v38, %v427_v37 }
  0xb5   : > { %v437_v46 = vadd.f32 %v662_v42, %v433_v41 }
  0xb7   : > { %v439_v49 = vmax.f32 %v437_v46, 0.0 }
  0xb8   : > { %v428_v44 = vpop.f32.mrf.mxu2 }
  0xb9   : > { %v429_v45 = vadd.f32 %v428_v44, %v415_v43 }
  0xbb   : > { %v434_v47 = vmul.f32 %v661_v38, %v429_v45 }
  0xbd   : > { %v438_v48 = vadd.f32 %v662_v42, %v434_v47 }
  0xbf   : > { %v440_v50 = vmax.f32 %v438_v48, 0.0 }
  0xc1   : > { %v650_v51 = vpack.c.bf16 %v440_v50, %v439_v49 }
  0xc3   : > { %651 = vst [vmem:[%s175_s23] sm:$0xff] %v650_v51  }
  0xc4 PF: > { %s13_s12 = sadd.s32 1, %s669_s12  }
  0xc5   : > { %p10_p4 = scmp.ge.s32.totalorder %s13_s12, 4  }
  0xc7   :  { %12 = sbr.rel (!%p10_p4) target bundleno = 1 (0x1), region = 62 }

// kernel: mask_cnn_forward.5
= control target key start
LH: loop header
LB: loop body
LE: loop exit
PB: predicated region body
PF: predicated region fallthrough
CT: control target
= control target key end

     0   :  { %s5282_s1 = inlined_call_operand.vmem [shape: bf16[896,256], index: 1, kind: input, shape index: {}]   ;;  %s5283_s0 = inlined_call_operand.vmem [shape: bf16[8,896], index: 0, kind: input, shape index: {}]   ;;  %s5284_s3 = inlined_call_operand.vmem [shape: bf16[256,128], index: 3, kind: input, shape index: {}]   ;;  %s5285_s2 = inlined_call_operand.vmem [shape: f32[2,256], index: 2, kind: input, shape index: {}]   ;;  %s5286_s4 = inlined_call_operand.vmem [shape: f32[2,128], index: 4, kind: input, shape index: {}]   ;;  %s5287_s6 = inlined_call_operand.vmem [shape: f32[2,128], index: 6, kind: input, shape index: {}]   ;;  %s5288_s5 = inlined_call_operand.vmem [shape: bf16[128,128], index: 5, kind: input, shape index: {}]   ;;  %s5289_s7 = inlined_call_operand.vmem [shape: bf16[128,128], index: 7, kind: input, shape index: {}]   ;;  %s5290_s8 = inlined_call_operand.vmem [shape: f32[2,128], index: 8, kind: input, shape index: {}]   ;;  %s5291_s9 = inlined_call_operand.vmem [shape: bf16[128,1024], index: 9, kind: input, shape index: {}]   ;;  %s5292_s11 = inlined_call_operand.vmem [shape: bf16[1024,128], index: 11, kind: input, shape index: {}]   ;;  %s5293_s10 = inlined_call_operand.vmem [shape: f32[1,1024], index: 10, kind: input, shape index: {}]   ;;  %s5294_s12 = inlined_call_operand.vmem [shape: f32[1,128], index: 12, kind: input, shape index: {}]   ;;  %s5295_s13 = inlined_call_operand.vmem [shape: f32[8,128], index: 13, kind: output, shape index: {}]  }
   0x1   :  { %v2485_v0 = vld [vmem:[%s5282_s1 + $0x70] sm:$0xf]  ;;  %v3531_v1 = vld [vmem:[%s5282_s1 + $0x74] sm:$0xf0]  ;;  %v2477_v9 = vld [vmem:[%s5282_s1 + $0x60] sm:$0xf] }
   0x2   :  { %v2549_v2 = vld [vmem:[%s5282_s1 + $0xf0] sm:$0xf]  ;;  %v2486_v3 = vor.u32 %v3531_v1, %v2485_v0  ;;  %v3547_v4 = vld [vmem:[%s5282_s1 + $0xf4] sm:$0xf0]  ;;  %v3529_v10 = vld [vmem:[%s5282_s1 + $0x64] sm:$0xf0] }
   0x3   :  { %v2613_v5 = vld [vmem:[%s5282_s1 + $0x170] sm:$0xf]  ;;  %v3563_v6 = vld [vmem:[%s5282_s1 + $0x174] sm:$0xf0]  ;;  %v2550_v7 = vor.u32 %v3547_v4, %v2549_v2  ;;  %v2541_v11 = vld [vmem:[%s5282_s1 + $0xe0] sm:$0xf]  ;;  %v2478_v12 = vor.u32 %v3529_v10, %v2477_v9 }
   0x4   :  { %v2614_v8 = vor.u32 %v3563_v6, %v2613_v5  ;;  %745 = vmatpush.bf16.msra.mxu0 %v2486_v3  ;;  %v3545_v13 = vld [vmem:[%s5282_s1 + $0xe4] sm:$0xf0]  ;;  %v2605_v14 = vld [vmem:[%s5282_s1 + $0x160] sm:$0xf]  ;;  %v2469_v18 = vld [vmem:[%s5282_s1 + $0x50] sm:$0xf] }
   0x5   :  { %v3561_v15 = vld [vmem:[%s5282_s1 + $0x164] sm:$0xf0]  ;;  %758 = vmatpush.bf16.msra.mxu1 %v2550_v7  ;;  %v2542_v16 = vor.u32 %v3545_v13, %v2541_v11  ;;  %v3527_v19 = vld [vmem:[%s5282_s1 + $0x54] sm:$0xf0]  ;;  %v2533_v20 = vld [vmem:[%s5282_s1 + $0xd0] sm:$0xf] }
   0x6   :  { %771 = vmatpush.bf16.msra.mxu2 %v2614_v8  ;;  %v2606_v17 = vor.u32 %v3561_v15, %v2605_v14  ;;  %v3543_v21 = vld [vmem:[%s5282_s1 + $0xd4] sm:$0xf0]  ;;  %v2597_v22 = vld [vmem:[%s5282_s1 + $0x150] sm:$0xf]  ;;  %v2470_v26 = vor.u32 %v3527_v19, %v2469_v18  ;;  %v2461_v28 = vld [vmem:[%s5282_s1 + $0x40] sm:$0xf] }
   0x7   :  { %v3559_v23 = vld [vmem:[%s5282_s1 + $0x154] sm:$0xf0]  ;;  %v2677_v24 = vld [vmem:[%s5282_s1 + $0x1f0] sm:$0xf]  ;;  %v3525_v29 = vld [vmem:[%s5282_s1 + $0x44] sm:$0xf0]  ;;  %v2534_v30 = vor.u32 %v3543_v21, %v2533_v20 }
   0x8   :  { %v3579_v25 = vld [vmem:[%s5282_s1 + $0x1f4] sm:$0xf0]  ;;  %746 = vmatpush.bf16.msra.mxu0 %v2478_v12  ;;  %v2598_v31 = vor.u32 %v3559_v23, %v2597_v22  ;;  %v2525_v32 = vld [vmem:[%s5282_s1 + $0xc0] sm:$0xf]  ;;  %v3541_v33 = vld [vmem:[%s5282_s1 + $0xc4] sm:$0xf0]  ;;  %v2462_v39 = vor.u32 %v3525_v29, %v2461_v28 }
   0x9   :  { %v2678_v27 = vor.u32 %v3579_v25, %v2677_v24  ;;  %759 = vmatpush.bf16.msra.mxu1 %v2542_v16  ;;  %v2669_v34 = vld [vmem:[%s5282_s1 + $0x1e0] sm:$0xf]  ;;  %v3557_v36 = vld [vmem:[%s5282_s1 + $0x144] sm:$0xf0]  ;;  %v2661_v40 = vld [vmem:[%s5282_s1 + $0x1d0] sm:$0xf]  ;;  %v2526_v42 = vor.u32 %v3541_v33, %v2525_v32 }
   0xa   :  { %772 = vmatpush.bf16.msra.mxu2 %v2606_v17  ;;  %v2589_v35 = vld [vmem:[%s5282_s1 + $0x140] sm:$0xf]  ;;  %v3577_v37 = vld [vmem:[%s5282_s1 + $0x1e4] sm:$0xf0]  ;;  %v3575_v41 = vld [vmem:[%s5282_s1 + $0x1d4] sm:$0xf0] }
   0xb   :  { %784 = vmatpush.bf16.msra.mxu3 %v2678_v27  ;;  %v2670_v38 = vor.u32 %v3577_v37, %v2669_v34  ;;  %v2590_v43 = vor.u32 %v3557_v36, %v2589_v35  ;;  %v2453_v44 = vld [vmem:[%s5282_s1 + $0x30] sm:$0xf]  ;;  %v3523_v45 = vld [vmem:[%s5282_s1 + $0x34] sm:$0xf0]  ;;  %v2662_v50 = vor.u32 %v3575_v41, %v2661_v40  ;;  %v2653_v51 = vld [vmem:[%s5282_s1 + $0x1c0] sm:$0xf] }
   0xc   :  { %747 = vmatpush.bf16.msra.mxu0 %v2470_v26  ;;  %v2517_v46 = vld [vmem:[%s5282_s1 + $0xb0] sm:$0xf]  ;;  %v3539_v47 = vld [vmem:[%s5282_s1 + $0xb4] sm:$0xf0]  ;;  %v3573_v52 = vld [vmem:[%s5282_s1 + $0x1c4] sm:$0xf0]  ;;  %v2454_v53 = vor.u32 %v3523_v45, %v2453_v44 }
   0xd   :  { %760 = vmatpush.bf16.msra.mxu1 %v2534_v30  ;;  %v2581_v48 = vld [vmem:[%s5282_s1 + $0x130] sm:$0xf]  ;;  %v3555_v49 = vld [vmem:[%s5282_s1 + $0x134] sm:$0xf0]  ;;  %v2518_v54 = vor.u32 %v3539_v47, %v2517_v46  ;;  %v2445_v56 = vld [vmem:[%s5282_s1 + $0x20] sm:$0xf]  ;;  %v2654_v62 = vor.u32 %v3573_v52, %v2653_v51 }
   0xe   :  { %773 = vmatpush.bf16.msra.mxu2 %v2598_v31  ;;  %v2582_v55 = vor.u32 %v3555_v49, %v2581_v48  ;;  %v3521_v57 = vld [vmem:[%s5282_s1 + $0x24] sm:$0xf0]  ;;  %v2509_v58 = vld [vmem:[%s5282_s1 + $0xa0] sm:$0xf]  ;;  %v2645_v63 = vld [vmem:[%s5282_s1 + $0x1b0] sm:$0xf] }
   0xf   :  { %785 = vmatpush.bf16.msra.mxu3 %v2670_v38  ;;  %v3537_v59 = vld [vmem:[%s5282_s1 + $0xa4] sm:$0xf0]  ;;  %v2573_v60 = vld [vmem:[%s5282_s1 + $0x120] sm:$0xf]  ;;  %v3571_v0 = vld [vmem:[%s5282_s1 + $0x1b4] sm:$0xf0]  ;;  %v2446_v1 = vor.u32 %v3521_v57, %v2445_v56 }
  0x10   :  { %748 = vmatpush.bf16.msra.mxu0 %v2462_v39  ;;  %v3553_v61 = vld [vmem:[%s5282_s1 + $0x124] sm:$0xf0]  ;;  %v2510_v2 = vor.u32 %v3537_v59, %v2509_v58  ;;  %v2437_v4 = vld [vmem:[%s5282_s1 + $0x10] sm:$0xf]  ;;  %v3519_v5 = vld [vmem:[%s5282_s1 + $0x14] sm:$0xf0]  ;;  %v2646_v10 = vor.u32 %v3571_v0, %v2645_v63 }
  0x11   :  { %761 = vmatpush.bf16.msra.mxu1 %v2526_v42  ;;  %v2574_v3 = vor.u32 %v3553_v61, %v2573_v60  ;;  %v2501_v6 = vld [vmem:[%s5282_s1 + $0x90] sm:$0xf]  ;;  %v3535_v7 = vld [vmem:[%s5282_s1 + $0x94] sm:$0xf0]  ;;  %v2637_v11 = vld [vmem:[%s5282_s1 + $0x1a0] sm:$0xf]  ;;  %v2438_v13 = vor.u32 %v3519_v5, %v2437_v4 }
  0x12   :  { %774 = vmatpush.bf16.msra.mxu2 %v2590_v43  ;;  %v2565_v8 = vld [vmem:[%s5282_s1 + $0x110] sm:$0xf]  ;;  %v3551_v9 = vld [vmem:[%s5282_s1 + $0x114] sm:$0xf0]  ;;  %v3569_v12 = vld [vmem:[%s5282_s1 + $0x1a4] sm:$0xf0]  ;;  %v2502_v16 = vor.u32 %v3535_v7, %v2501_v6 }
  0x13   :  { %786 = vmatpush.bf16.msra.mxu3 %v2662_v50  ;;  %v2429_v14 = vld [vmem:[%s5282_s1] sm:$0xf]  ;;  %v3517_v15 = vld [vmem:[%s5282_s1 + $0x4] sm:$0xf0]  ;;  %v2566_v17 = vor.u32 %v3551_v9, %v2565_v8  ;;  %v2741_v22 = vld [vmem:[%s5282_s1 + $0x270] sm:$0xf]  ;;  %v2638_v24 = vor.u32 %v3569_v12, %v2637_v11 }
  0x14   :  { %749 = vmatpush.bf16.msra.mxu0 %v2454_v53  ;;  %v2493_v18 = vld [vmem:[%s5282_s1 + $0x80] sm:$0xf]  ;;  %v3533_v19 = vld [vmem:[%s5282_s1 + $0x84] sm:$0xf0]  ;;  %v3595_v23 = vld [vmem:[%s5282_s1 + $0x274] sm:$0xf0]  ;;  %v2430_v28 = vor.u32 %v3517_v15, %v2429_v14 }
  0x15   :  { %762 = vmatpush.bf16.msra.mxu1 %v2518_v54  ;;  %v2557_v20 = vld [vmem:[%s5282_s1 + $0x100] sm:$0xf]  ;;  %v3549_v21 = vld [vmem:[%s5282_s1 + $0x104] sm:$0xf0]  ;;  %v2805_v25 = vld [vmem:[%s5282_s1 + $0x2f0] sm:$0xf]  ;;  %v2494_v32 = vor.u32 %v3533_v19, %v2493_v18  ;;  %v2742_v35 = vor.u32 %v3595_v23, %v2741_v22 }
  0x16   :  { %775 = vmatpush.bf16.msra.mxu2 %v2582_v55  ;;  %v3611_v26 = vld [vmem:[%s5282_s1 + $0x2f4] sm:$0xf0]  ;;  %v2869_v27 = vld [vmem:[%s5282_s1 + $0x370] sm:$0xf]  ;;  %v2558_v33 = vor.u32 %v3549_v21, %v2557_v20  ;;  %v2733_v34 = vld [vmem:[%s5282_s1 + $0x260] sm:$0xf] }
  0x17   :  { %787 = vmatpush.bf16.msra.mxu3 %v2654_v62  ;;  %v3627_v29 = vld [vmem:[%s5282_s1 + $0x374] sm:$0xf0]  ;;  %v2629_v30 = vld [vmem:[%s5282_s1 + $0x190] sm:$0xf]  ;;  %v2806_v36 = vor.u32 %v3611_v26, %v2805_v25  ;;  %v3593_v37 = vld [vmem:[%s5282_s1 + $0x264] sm:$0xf0] }
  0x18   :  { %750 = vmatpush.bf16.msra.mxu0 %v2446_v1  ;;  %v3567_v31 = vld [vmem:[%s5282_s1 + $0x194] sm:$0xf0]  ;;  %v2797_v38 = vld [vmem:[%s5282_s1 + $0x2e0] sm:$0xf]  ;;  %v3609_v39 = vld [vmem:[%s5282_s1 + $0x2e4] sm:$0xf0]  ;;  %v2870_v40 = vor.u32 %v3627_v29, %v2869_v27  ;;  %v2734_v48 = vor.u32 %v3593_v37, %v2733_v34 }
  0x19   :  { %763 = vmatpush.bf16.msra.mxu1 %v2510_v2  ;;  %v2861_v41 = vld [vmem:[%s5282_s1 + $0x360] sm:$0xf]  ;;  %v3625_v42 = vld [vmem:[%s5282_s1 + $0x364] sm:$0xf0]  ;;  %v2630_v43 = vor.u32 %v3567_v31, %v2629_v30  ;;  %v3530_v49 = vld [vmem:[%s5282_s1 + $0x74] sm:$0xf]  ;;  %v2798_v51 = vor.u32 %v3609_v39, %v2797_v38 }
  0x1a   :  { %776 = vmatpush.bf16.msra.mxu2 %v2574_v3  ;;  %v45_v44 = vld [vmem:[%s5283_s0 + $0x8] sm:$0xff]  ;;  %v2621_v45 = vld [vmem:[%s5282_s1 + $0x180] sm:$0xf]  ;;  %v2487_v50 = vld [vmem:[%s5282_s1 + $0x78] sm:$0xf0]  ;;  %v2862_v52 = vor.u32 %v3625_v42, %v2861_v41 }
  0x1b   :  { %788 = vmatpush.bf16.msra.mxu3 %v2646_v10  ;;  %v3565_v46 = vld [vmem:[%s5282_s1 + $0x184] sm:$0xf0]  ;;  %v166_v47 = vunpack.c.l.b16 %v45_v44  ;;  %v2725_v53 = vld [vmem:[%s5282_s1 + $0x250] sm:$0xf]  ;;  %v44_v55 = vld [vmem:[%s5283_s0] sm:$0xff]  ;;  %v167_v62 = vunpack.c.h.b16 %v45_v44  ;;  %v2490_v1 = vor.u32 %v3530_v49, %v2487_v50 }
  0x1c   :  { %751 = vmatpush.bf16.msra.mxu0 %v2438_v13  ;;  %v3591_v56 = vld [vmem:[%s5282_s1 + $0x254] sm:$0xf0]  ;;  %v2789_v57 = vld [vmem:[%s5282_s1 + $0x2d0] sm:$0xf]  ;;  %v2622_v59 = vor.u32 %v3565_v46, %v2621_v45  ;;  %v164_v60 = vunpack.c.l.b16 %v44_v55  ;;  %v165_v61 = vunpack.c.h.b16 %v44_v55  ;;  %v3528_v2 = vld [vmem:[%s5282_s1 + $0x64] sm:$0xf] }
  0x1d   :  { %764 = vmatpush.bf16.msra.mxu1 %v2502_v16  ;;  %v4105_v54 = vpack.c.b16 %v166_v47, %v166_v47  ;;  %v3607_v58 = vld [vmem:[%s5282_s1 + $0x2d4] sm:$0xf0]  ;;  %v2853_v63 = vld [vmem:[%s5282_s1 + $0x350] sm:$0xf]  ;;  %v2479_v3 = vld [vmem:[%s5282_s1 + $0x68] sm:$0xf0]  ;;  %v2726_v6 = vor.u32 %v3591_v56, %v2725_v53  ;;  %v4148_v13 = vpack.c.b16 %v167_v62, %v167_v62 }
  0x1e   :  { %777 = vmatpush.bf16.msra.mxu2 %v2566_v17  ;;  %v3623_v0 = vld [vmem:[%s5282_s1 + $0x354] sm:$0xf0]  ;;  %v4132_v4 = vpack.c.b16 %v164_v60, %v164_v60  ;;  %v4134_v5 = vpack.c.b16 %v165_v61, %v165_v61  ;;  %v2790_v7 = vor.u32 %v3607_v58, %v2789_v57  ;;  %v2717_v8 = vld [vmem:[%s5282_s1 + $0x240] sm:$0xf]  ;;  %v3589_v10 = vld [vmem:[%s5282_s1 + $0x244] sm:$0xf0]  ;;  %v2482_v16 = vor.u32 %v3528_v2, %v2479_v3 }
  0x1f   :  { %789 = vmatpush.bf16.msra.mxu3 %v2638_v24  ;;  %v2854_v9 = vor.u32 %v3623_v0, %v2853_v63  ;;  %v2781_v11 = vld [vmem:[%s5282_s1 + $0x2c0] sm:$0xf]  ;;  %v3605_v12 = vld [vmem:[%s5282_s1 + $0x2c4] sm:$0xf0]  ;;  %v3526_v17 = vld [vmem:[%s5282_s1 + $0x54] sm:$0xf]  ;;  %v2718_v19 = vor.u32 %v3589_v10, %v2717_v8 }
  0x20   :  { %752 = vmatpush.bf16.msra.mxu0 %v2430_v28  ;;  %v2845_v14 = vld [vmem:[%s5282_s1 + $0x340] sm:$0xf]  ;;  %v3621_v15 = vld [vmem:[%s5282_s1 + $0x344] sm:$0xf0]  ;;  %v2471_v18 = vld [vmem:[%s5282_s1 + $0x58] sm:$0xf0]  ;;  %v2782_v20 = vor.u32 %v3605_v12, %v2781_v11 }
  0x21   :  { %765 = vmatpush.bf16.msra.mxu1 %v2494_v32  ;;  %v2709_v21 = vld [vmem:[%s5282_s1 + $0x230] sm:$0xf]  ;;  %v2846_v22 = vor.u32 %v3621_v15, %v2845_v14  ;;  %v3587_v23 = vld [vmem:[%s5282_s1 + $0x234] sm:$0xf0]  ;;  %v2474_v28 = vor.u32 %v3526_v17, %v2471_v18  ;;  %v3524_v29 = vld [vmem:[%s5282_s1 + $0x44] sm:$0xf] }
  0x22   :  { %778 = vmatpush.bf16.msra.mxu2 %v2558_v33  ;;  %v2773_v24 = vld [vmem:[%s5282_s1 + $0x2b0] sm:$0xf]  ;;  %v3603_v25 = vld [vmem:[%s5282_s1 + $0x2b4] sm:$0xf0]  ;;  %v2463_v30 = vld [vmem:[%s5282_s1 + $0x48] sm:$0xf0]  ;;  %v2710_v31 = vor.u32 %v3587_v23, %v2709_v21 }
  0x23   :  { %790 = vmatpush.bf16.msra.mxu3 %v2630_v43  ;;  %753 = vmatmul.bf16.vlgmr.msra.gmra.mxu0 %v4132_v4  ;;  %v2837_v26 = vld [vmem:[%s5282_s1 + $0x330] sm:$0xf]  ;;  %v3619_v27 = vld [vmem:[%s5282_s1 + $0x334] sm:$0xf0]  ;;  %v2774_v32 = vor.u32 %v3603_v25, %v2773_v24  ;;  %v2701_v33 = vld [vmem:[%s5282_s1 + $0x220] sm:$0xf] }
  0x24   :  { %797 = vmatpush.bf16.msrb.mxu0 %v2742_v35  ;;  %766 = vmatmul.bf16.vlgmr.msra.gmra.mxu1 %v4134_v5  ;;  %v2838_v34 = vor.u32 %v3619_v27, %v2837_v26  ;;  %v3585_v35 = vld [vmem:[%s5282_s1 + $0x224] sm:$0xf0]  ;;  %v2829_v38 = vld [vmem:[%s5282_s1 + $0x320] sm:$0xf]  ;;  %v3522_v41 = vld [vmem:[%s5282_s1 + $0x34] sm:$0xf] }
  0x25   :  { %810 = vmatpush.bf16.msrb.mxu1 %v2806_v36  ;;  %779 = vmatmul.bf16.vlgmr.msra.gmra.mxu2 %v4105_v54  ;;  %v2765_v36 = vld [vmem:[%s5282_s1 + $0x2a0] sm:$0xf]  ;;  %v3601_v37 = vld [vmem:[%s5282_s1 + $0x2a4] sm:$0xf0]  ;;  %v2455_v42 = vld [vmem:[%s5282_s1 + $0x38] sm:$0xf0]  ;;  %v2702_v43 = vor.u32 %v3585_v35, %v2701_v33 }
  0x26   :  { %823 = vmatpush.bf16.msrb.mxu2 %v2870_v40  ;;  %v3617_v39 = vld [vmem:[%s5282_s1 + $0x324] sm:$0xf0]  ;;  %v2466_v40 = vor.u32 %v3524_v29, %v2463_v30  ;;  %v2766_v44 = vor.u32 %v3601_v37, %v2765_v36  ;;  %v2693_v45 = vld [vmem:[%s5282_s1 + $0x210] sm:$0xf]  ;;  %v3583_v47 = vld [vmem:[%s5282_s1 + $0x214] sm:$0xf0] }
  0x27   :  { %791 = vmatpush.bf16.msra.mxu3 %v2622_v59  ;;  %v2830_v46 = vor.u32 %v3617_v39, %v2829_v38  ;;  %v3599_v49 = vld [vmem:[%s5282_s1 + $0x294] sm:$0xf0]  ;;  %v2821_v50 = vld [vmem:[%s5282_s1 + $0x310] sm:$0xf]  ;;  %v2685_v53 = vld [vmem:[%s5282_s1 + $0x200] sm:$0xf]  ;;  %v2694_v58 = vor.u32 %v3583_v47, %v2693_v45 }
  0x28   :  { %798 = vmatpush.bf16.msrb.mxu0 %v2734_v48  ;;  %v2757_v48 = vld [vmem:[%s5282_s1 + $0x290] sm:$0xf]  ;;  %v3581_v55 = vld [vmem:[%s5282_s1 + $0x204] sm:$0xf0]  ;;  %v3520_v56 = vld [vmem:[%s5282_s1 + $0x24] sm:$0xf] }
  0x29   :  { %811 = vmatpush.bf16.msrb.mxu1 %v2798_v51  ;;  %v3615_v51 = vld [vmem:[%s5282_s1 + $0x314] sm:$0xf0]  ;;  %v2447_v57 = vld [vmem:[%s5282_s1 + $0x28] sm:$0xf0]  ;;  %v2758_v59 = vor.u32 %v3599_v49, %v2757_v48  ;;  %v2749_v60 = vld [vmem:[%s5282_s1 + $0x280] sm:$0xf]  ;;  %v2686_v15 = vor.u32 %v3581_v55, %v2685_v53 }
  0x2a   :  { %824 = vmatpush.bf16.msrb.mxu2 %v2862_v52  ;;  %792 = vmatmul.bf16.vlgmr.msra.gmra.mxu3 %v4148_v13  ;;  %v2458_v52 = vor.u32 %v3522_v41, %v2455_v42  ;;  %v3597_v61 = vld [vmem:[%s5282_s1 + $0x284] sm:$0xf0]  ;;  %v46_v62 = vld [vmem:[%s5283_s0 + $0x10] sm:$0xff]  ;;  %v2822_v63 = vor.u32 %v3615_v51, %v2821_v50  ;;  %v2813_v0 = vld [vmem:[%s5282_s1 + $0x300] sm:$0xf]  ;;  %v2450_v8 = vor.u32 %v3520_v56, %v2447_v57 }
  0x2b   :  { %836 = vmatpush.bf16.msrb.mxu3 %v2490_v1  ;;  %v3613_v1 = vld [vmem:[%s5282_s1 + $0x304] sm:$0xf0]  ;;  %v47_v2 = vld [vmem:[%s5283_s0 + $0x18] sm:$0xf]  ;;  %v3546_v3 = vld [vmem:[%s5282_s1 + $0xf4] sm:$0xf]  ;;  %v168_v10 = vunpack.c.l.b16 %v46_v62  ;;  %v169_v11 = vunpack.c.h.b16 %v46_v62 }
  0x2c   :  { %799 = vmatpush.bf16.msrb.mxu0 %v2726_v6  ;;  %v2551_v6 = vld [vmem:[%s5282_s1 + $0xf8] sm:$0xf0]  ;;  %v3518_v12 = vld [vmem:[%s5282_s1 + $0x14] sm:$0xf]  ;;  %v170_v17 = vunpack.c.l.b16 %v47_v2  ;;  %v2814_v18 = vor.u32 %v3613_v1, %v2813_v0  ;;  %v2543_v21 = vld [vmem:[%s5282_s1 + $0xe8] sm:$0xf0] }
  0x2d   :  { %812 = vmatpush.bf16.msrb.mxu1 %v2790_v7  ;;  %v3562_v7 = vld [vmem:[%s5282_s1 + $0x174] sm:$0xf]  ;;  %v2439_v14 = vld [vmem:[%s5282_s1 + $0x18] sm:$0xf0]  ;;  %v3560_v23 = vld [vmem:[%s5282_s1 + $0x164] sm:$0xf]  ;;  %v4294_v27 = vpack.c.b16 %v168_v10, %v168_v10  ;;  %v4299_v29 = vpack.c.b16 %v169_v11, %v169_v11 }
  0x2e   :  { %825 = vmatpush.bf16.msrb.mxu2 %v2854_v9  ;;  %v2615_v9 = vld [vmem:[%s5282_s1 + $0x178] sm:$0xf0]  ;;  %v2442_v24 = vor.u32 %v3518_v12, %v2439_v14  ;;  %v3578_v25 = vld [vmem:[%s5282_s1 + $0x1f4] sm:$0xf]  ;;  %v3516_v30 = vld [vmem:[%s5282_s1 + $0x4] sm:$0xf] }
  0x2f   :  { %837 = vmatpush.bf16.msrb.mxu3 %v2482_v16  ;;  %v2750_v16 = vor.u32 %v3597_v61, %v2749_v60  ;;  %v2679_v26 = vld [vmem:[%s5282_s1 + $0x1f8] sm:$0xf0]  ;;  %v3594_v33 = vld [vmem:[%s5282_s1 + $0x274] sm:$0xf]  ;;  %v3576_v41 = vld [vmem:[%s5282_s1 + $0x1e4] sm:$0xf] }
  0x30   :  { %800 = vmatpush.bf16.msrb.mxu0 %v2718_v19  ;;  %v2554_v19 = vor.u32 %v3546_v3, %v2551_v6  ;;  %v3542_v36 = vld [vmem:[%s5282_s1 + $0xd4] sm:$0xf]  ;;  %v2682_v37 = vor.u32 %v3578_v25, %v2679_v26  ;;  %v2535_v39 = vld [vmem:[%s5282_s1 + $0xd8] sm:$0xf0]  ;;  %v2671_v42 = vld [vmem:[%s5282_s1 + $0x1e8] sm:$0xf0] }
  0x31   :  { %813 = vmatpush.bf16.msrb.mxu1 %v2782_v20  ;;  %v3544_v20 = vld [vmem:[%s5282_s1 + $0xe4] sm:$0xf]  ;;  %v2735_v47 = vld [vmem:[%s5282_s1 + $0x268] sm:$0xf0]  ;;  %v2538_v48 = vor.u32 %v3542_v36, %v2535_v39  ;;  %v2674_v50 = vor.u32 %v3576_v41, %v2671_v42  ;;  %v3574_v53 = vld [vmem:[%s5282_s1 + $0x1d4] sm:$0xf] }
  0x32   :  { %826 = vmatpush.bf16.msrb.mxu2 %v2846_v22  ;;  %v2618_v22 = vor.u32 %v3562_v7, %v2615_v9  ;;  %v2546_v35 = vor.u32 %v3544_v20, %v2543_v21  ;;  %v3540_v49 = vld [vmem:[%s5282_s1 + $0xc4] sm:$0xf]  ;;  %v2663_v55 = vld [vmem:[%s5282_s1 + $0x1d8] sm:$0xf0]  ;;  %v2591_v57 = vld [vmem:[%s5282_s1 + $0x148] sm:$0xf0] }
  0x33   :  { %838 = vmatpush.bf16.msrb.mxu3 %v2474_v28  ;;  %v2607_v28 = vld [vmem:[%s5282_s1 + $0x168] sm:$0xf0]  ;;  %v3556_v56 = vld [vmem:[%s5282_s1 + $0x144] sm:$0xf]  ;;  %v2727_v60 = vld [vmem:[%s5282_s1 + $0x258] sm:$0xf0] }
  0x34   :  { %801 = vmatpush.bf16.msrb.mxu0 %v2710_v31  ;;  %v2431_v31 = vld [vmem:[%s5282_s1 + $0x8] sm:$0xf0]  ;;  %v2610_v38 = vor.u32 %v3560_v23, %v2607_v28  ;;  %v3538_v62 = vld [vmem:[%s5282_s1 + $0xb4] sm:$0xf]  ;;  %v2594_v0 = vor.u32 %v3556_v56, %v2591_v57  ;;  %v2519_v1 = vld [vmem:[%s5282_s1 + $0xb8] sm:$0xf0] }
  0x35   :  { %814 = vmatpush.bf16.msrb.mxu1 %v2774_v32  ;;  %v4307_v32 = vpack.c.b16 %v170_v17, %v170_v17  ;;  %v3572_v2 = vld [vmem:[%s5282_s1 + $0x1c4] sm:$0xf]  ;;  %v2655_v3 = vld [vmem:[%s5282_s1 + $0x1c8] sm:$0xf0]  ;;  %v3554_v6 = vld [vmem:[%s5282_s1 + $0x134] sm:$0xf] }
  0x36   :  { %827 = vmatpush.bf16.msrb.mxu2 %v2838_v34  ;;  %v2743_v34 = vld [vmem:[%s5282_s1 + $0x278] sm:$0xf0]  ;;  %v3588_v9 = vld [vmem:[%s5282_s1 + $0x244] sm:$0xf]  ;;  %v2719_v10 = vld [vmem:[%s5282_s1 + $0x248] sm:$0xf0]  ;;  %v2658_v12 = vor.u32 %v3572_v2, %v2655_v3 }
  0x37   :  { %839 = vmatpush.bf16.msrb.mxu3 %v2466_v40  ;;  %v2434_v40 = vor.u32 %v3516_v30, %v2431_v31  ;;  %v2746_v45 = vor.u32 %v3594_v33, %v2743_v34  ;;  %v2583_v7 = vld [vmem:[%s5282_s1 + $0x138] sm:$0xf0]  ;;  %v3536_v11 = vld [vmem:[%s5282_s1 + $0xa4] sm:$0xf]  ;;  %v2722_v20 = vor.u32 %v3588_v9, %v2719_v10  ;;  %v3586_v21 = vld [vmem:[%s5282_s1 + $0x234] sm:$0xf] }
  0x38   :  { %802 = vmatpush.bf16.msrb.mxu0 %v2702_v43  ;;  %v3558_v43 = vld [vmem:[%s5282_s1 + $0x154] sm:$0xf]  ;;  %v2586_v14 = vor.u32 %v3554_v6, %v2583_v7  ;;  %v2647_v17 = vld [vmem:[%s5282_s1 + $0x1b8] sm:$0xf0]  ;;  %v3568_v30 = vld [vmem:[%s5282_s1 + $0x1a4] sm:$0xf] }
  0x39   :  { %815 = vmatpush.bf16.msrb.mxu1 %v2766_v44  ;;  %v2599_v44 = vld [vmem:[%s5282_s1 + $0x158] sm:$0xf0]  ;;  %v2639_v31 = vld [vmem:[%s5282_s1 + $0x1a8] sm:$0xf0]  ;;  %v3550_v33 = vld [vmem:[%s5282_s1 + $0x114] sm:$0xf] }
  0x3a   :  { %828 = vmatpush.bf16.msrb.mxu2 %v2830_v46  ;;  %v3592_v46 = vld [vmem:[%s5282_s1 + $0x264] sm:$0xf]  ;;  %v2602_v51 = vor.u32 %v3558_v43, %v2599_v44  ;;  %v2503_v28 = vld [vmem:[%s5282_s1 + $0x98] sm:$0xf0]  ;;  %v2642_v42 = vor.u32 %v3568_v30, %v2639_v31  ;;  %v2559_v44 = vld [vmem:[%s5282_s1 + $0x108] sm:$0xf0] }
  0x3b   :  { %840 = vmatpush.bf16.msrb.mxu3 %v2458_v52  ;;  %v2527_v52 = vld [vmem:[%s5282_s1 + $0xc8] sm:$0xf0]  ;;  %v2567_v34 = vld [vmem:[%s5282_s1 + $0x118] sm:$0xf0]  ;;  %v3584_v36 = vld [vmem:[%s5282_s1 + $0x224] sm:$0xf] }
  0x3c   :  { %803 = vmatpush.bf16.msrb.mxu0 %v2694_v58  ;;  %v2738_v58 = vor.u32 %v3592_v46, %v2735_v47  ;;  %v2530_v61 = vor.u32 %v3540_v49, %v2527_v52  ;;  %v3532_v39 = vld [vmem:[%s5282_s1 + $0x84] sm:$0xf]  ;;  %v2570_v43 = vor.u32 %v3550_v33, %v2567_v34  ;;  %v2631_v46 = vld [vmem:[%s5282_s1 + $0x198] sm:$0xf0]  ;;  %v3610_v47 = vld [vmem:[%s5282_s1 + $0x2f4] sm:$0xf] }
  0x3d   :  { %816 = vmatpush.bf16.msrb.mxu1 %v2758_v59  ;;  %v3590_v59 = vld [vmem:[%s5282_s1 + $0x254] sm:$0xf]  ;;  %v3548_v41 = vld [vmem:[%s5282_s1 + $0x104] sm:$0xf]  ;;  %v2863_v2 = vld [vmem:[%s5282_s1 + $0x368] sm:$0xf0] }
  0x3e   :  { %829 = vmatpush.bf16.msrb.mxu2 %v2822_v63  ;;  %v2666_v63 = vor.u32 %v3574_v53, %v2663_v55  ;;  %v3626_v49 = vld [vmem:[%s5282_s1 + $0x374] sm:$0xf]  ;;  %v2695_v53 = vld [vmem:[%s5282_s1 + $0x218] sm:$0xf0]  ;;  %v2562_v57 = vor.u32 %v3548_v41, %v2559_v44  ;;  %v3580_v3 = vld [vmem:[%s5282_s1 + $0x204] sm:$0xf] }
  0x3f   :  { %841 = vmatpush.bf16.msrb.mxu3 %v2450_v8  ;;  %v2730_v8 = vor.u32 %v3590_v59, %v2727_v60  ;;  %v3582_v52 = vld [vmem:[%s5282_s1 + $0x214] sm:$0xf]  ;;  %v3564_v59 = vld [vmem:[%s5282_s1 + $0x184] sm:$0xf]  ;;  %v2623_v60 = vld [vmem:[%s5282_s1 + $0x188] sm:$0xf0] }
  0x40   :  { %804 = vmatpush.bf16.msrb.mxu0 %v2686_v15  ;;  %v2511_v15 = vld [vmem:[%s5282_s1 + $0xa8] sm:$0xf0]  ;;  %v2626_v7 = vor.u32 %v3564_v59, %v2623_v60  ;;  %v3606_v10 = vld [vmem:[%s5282_s1 + $0x2d4] sm:$0xf] }
  0x41   :  { %817 = vmatpush.bf16.msrb.mxu1 %v2750_v16  ;;  %v3570_v16 = vld [vmem:[%s5282_s1 + $0x1b4] sm:$0xf]  ;;  %v2514_v23 = vor.u32 %v3536_v11, %v2511_v15  ;;  %v2687_v6 = vld [vmem:[%s5282_s1 + $0x208] sm:$0xf0] }
  0x42   :  { %830 = vmatpush.bf16.msrb.mxu2 %v2814_v18  ;;  %v3552_v18 = vld [vmem:[%s5282_s1 + $0x124] sm:$0xf]  ;;  %v2650_v25 = vor.u32 %v3570_v16, %v2647_v17  ;;  %v2690_v11 = vor.u32 %v3580_v3, %v2687_v6  ;;  %v2783_v17 = vld [vmem:[%s5282_s1 + $0x2c8] sm:$0xf0]  ;;  %v3598_v34 = vld [vmem:[%s5282_s1 + $0x294] sm:$0xf] }
  0x43   :  { %842 = vmatpush.bf16.msrb.mxu3 %v2442_v24  ;;  %805 = vmatmul.bf16.vlgmr.msrb.gmra.mxu0 %v4294_v27  ;;  %v3534_v24 = vld [vmem:[%s5282_s1 + $0x94] sm:$0xf]  ;;  %v2831_v30 = vld [vmem:[%s5282_s1 + $0x328] sm:$0xf0] }
  0x44   :  { %849 = vmatpush.bf16.msra.mxu0 %v2554_v19  ;;  %818 = vmatmul.bf16.vlgmr.msrb.gmra.mxu1 %v4299_v29  ;;  %v2575_v19 = vld [vmem:[%s5282_s1 + $0x128] sm:$0xf0]  ;;  %v927_v6 = vld [vmem:[%s5285_s2] ss:$2 sm:$0x3] }
  0x45   :  { %862 = vmatpush.bf16.msra.mxu1 %v2618_v22  ;;  %831 = vmatmul.bf16.vlgmr.msrb.gmra.mxu2 %v4307_v32  ;;  %v2711_v22 = vld [vmem:[%s5282_s1 + $0x238] sm:$0xf0]  ;;  %v2578_v26 = vor.u32 %v3552_v18, %v2575_v19  ;;  %v3620_v18 = vld [vmem:[%s5282_s1 + $0x344] sm:$0xf]  ;;  %v2751_v41 = vld [vmem:[%s5282_s1 + $0x288] sm:$0xf0] }
  0x46   :  { %875 = vmatpush.bf16.msra.mxu2 %v2682_v37  ;;  %v2703_v37 = vld [vmem:[%s5282_s1 + $0x228] sm:$0xf0] }
  0x47   :  { %843 = vmatpush.bf16.msrb.mxu3 %v2434_v40  ;;  %v2495_v40 = vld [vmem:[%s5282_s1 + $0x88] sm:$0xf0] }
  0x48   :  { %850 = vmatpush.bf16.msra.mxu0 %v2546_v35  ;;  %v2714_v35 = vor.u32 %v3586_v21, %v2711_v22  ;;  %v2498_v55 = vor.u32 %v3532_v39, %v2495_v40  ;;  %v3602_v21 = vld [vmem:[%s5282_s1 + $0x2b4] sm:$0xf]  ;;  %v3596_v40 = vld [vmem:[%s5282_s1 + $0x284] sm:$0xf] }
  0x49   :  { %863 = vmatpush.bf16.msra.mxu1 %v2610_v38  ;;  %v2506_v38 = vor.u32 %v3534_v24, %v2503_v28  ;;  %v3618_v22 = vld [vmem:[%s5282_s1 + $0x334] sm:$0xf]  ;;  %v3616_v28 = vld [vmem:[%s5282_s1 + $0x324] sm:$0xf]  ;;  %v2754_v44 = vor.u32 %v3596_v40, %v2751_v41 }
  0x4a   :  { %876 = vmatpush.bf16.msra.mxu2 %v2674_v50  ;;  %844 = vmatmul.bf16.vlgmr.msrb.gmra.mxu3 %v4132_v4  ;;  %v2522_v4 = vor.u32 %v3538_v62, %v2519_v1  ;;  %v2706_v50 = vor.u32 %v3584_v36, %v2703_v37  ;;  %v3608_v62 = vld [vmem:[%s5282_s1 + $0x2e4] sm:$0xf]  ;;  %v2698_v1 = vor.u32 %v3582_v52, %v2695_v53  ;;  %v3614_v36 = vld [vmem:[%s5282_s1 + $0x314] sm:$0xf]  ;;  %v2823_v37 = vld [vmem:[%s5282_s1 + $0x318] sm:$0xf0] }
  0x4b   :  { %888 = vmatpush.bf16.msra.mxu3 %v2746_v45  ;;  %v3566_v45 = vld [vmem:[%s5282_s1 + $0x194] sm:$0xf]  ;;  %v2834_v33 = vor.u32 %v3616_v28, %v2831_v30  ;;  %v2826_v39 = vor.u32 %v3614_v36, %v2823_v37  ;;  %v3629_v53 = vld [vmem:[%s5284_s3 + $0x8] sm:$0xff] }
  0x4c   :  { %851 = vmatpush.bf16.msra.mxu0 %v2538_v48  ;;  %v2807_v48 = vld [vmem:[%s5282_s1 + $0x2f8] sm:$0xf0]  ;;  %v2634_v56 = vor.u32 %v3566_v45, %v2631_v46 }
  0x4d   :  { %864 = vmatpush.bf16.msra.mxu1 %v2602_v51  ;;  %v2871_v51 = vld [vmem:[%s5282_s1 + $0x378] sm:$0xf0] }
  0x4e   :  { %877 = vmatpush.bf16.msra.mxu2 %v2666_v63  ;;  %v2799_v63 = vld [vmem:[%s5282_s1 + $0x2e8] sm:$0xf0]  ;;  %v3635_v46 = vld [vmem:[%s5284_s3 + $0x38] sm:$0xff] }
  0x4f   :  { %889 = vmatpush.bf16.msra.mxu3 %v2738_v58  ;;  %v2810_v58 = vor.u32 %v3610_v47, %v2807_v48  ;;  %v3634_v47 = vld [vmem:[%s5284_s3 + $0x30] sm:$0xff]  ;;  %v3633_v48 = vld [vmem:[%s5284_s3 + $0x28] sm:$0xff] }
  0x50   :  { %852 = vmatpush.bf16.msra.mxu0 %v2530_v61  ;;  %v2874_v61 = vor.u32 %v3626_v49, %v2871_v51  ;;  %v3630_v49 = vld [vmem:[%s5284_s3 + $0x10] sm:$0xff] }
  0x51   :  { %865 = vmatpush.bf16.msra.mxu1 %v2594_v0  ;;  %v3624_v0 = vld [vmem:[%s5282_s1 + $0x364] sm:$0xf] }
  0x52   :  { %878 = vmatpush.bf16.msra.mxu2 %v2658_v12  ;;  %v2866_v9 = vor.u32 %v3624_v0, %v2863_v2  ;;  %v3622_v12 = vld [vmem:[%s5282_s1 + $0x354] sm:$0xf]  ;;  %v3643_v2 = vld [vmem:[%s5284_s3 + $0x78] sm:$0xff] }
  0x53   :  { %890 = vmatpush.bf16.msra.mxu3 %v2730_v8  ;;  %v2802_v8 = vor.u32 %v3608_v62, %v2799_v63 }
  0x54   :  { %853 = vmatpush.bf16.msra.mxu0 %v2522_v4  ;;  %v2791_v4 = vld [vmem:[%s5282_s1 + $0x2d8] sm:$0xf0] }
  0x55   :  { %866 = vmatpush.bf16.msra.mxu1 %v2586_v14  ;;  %v2855_v14 = vld [vmem:[%s5282_s1 + $0x358] sm:$0xf0]  ;;  %v2794_v15 = vor.u32 %v3606_v10, %v2791_v4 }
  0x56   :  { %879 = vmatpush.bf16.msra.mxu2 %v2650_v25  ;;  %v2858_v16 = vor.u32 %v3622_v12, %v2855_v14  ;;  %v3600_v25 = vld [vmem:[%s5282_s1 + $0x2a4] sm:$0xf] }
  0x57   :  { %891 = vmatpush.bf16.msra.mxu3 %v2722_v20 }
  0x58   :  { %854 = vmatpush.bf16.msra.mxu0 %v2514_v23  ;;  %v2839_v23 = vld [vmem:[%s5282_s1 + $0x338] sm:$0xf0] }
  0x59   :  { %867 = vmatpush.bf16.msra.mxu1 %v2578_v26  ;;  %v2842_v24 = vor.u32 %v3618_v22, %v2839_v23  ;;  %v2767_v26 = vld [vmem:[%s5282_s1 + $0x2a8] sm:$0xf0]  ;;  %v3638_v23 = vld [vmem:[%s5284_s3 + $0x50] sm:$0xff] }
  0x5a   :  { %880 = vmatpush.bf16.msra.mxu2 %v2642_v42  ;;  %v2770_v31 = vor.u32 %v3600_v25, %v2767_v26  ;;  %v3612_v42 = vld [vmem:[%s5282_s1 + $0x304] sm:$0xf]  ;;  %v3637_v25 = vld [vmem:[%s5284_s3 + $0x48] sm:$0xff] }
  0x5b   :  { %892 = vmatpush.bf16.msra.mxu3 %v2714_v35  ;;  %v2759_v35 = vld [vmem:[%s5282_s1 + $0x298] sm:$0xf0]  ;;  %v3636_v26 = vld [vmem:[%s5284_s3 + $0x40] sm:$0xff] }
  0x5c   :  { %855 = vmatpush.bf16.msra.mxu0 %v2506_v38  ;;  %v2762_v38 = vor.u32 %v3598_v34, %v2759_v35 }
  0x5d   :  { %868 = vmatpush.bf16.msra.mxu1 %v2570_v43  ;;  %v2815_v43 = vld [vmem:[%s5282_s1 + $0x308] sm:$0xf0] }
  0x5e   :  { %881 = vmatpush.bf16.msra.mxu2 %v2634_v56  ;;  %v2818_v45 = vor.u32 %v3612_v42, %v2815_v43  ;;  %v930_v43 = vperm.slane %v927_v6, 1 }
  0x5f   :  { %893 = vmatpush.bf16.msra.mxu3 %v2706_v50 }
  0x60   :  { %856 = vmatpush.bf16.msra.mxu0 %v2498_v55  ;;  %v3628_v55 = vld [vmem:[%s5284_s3] sm:$0xff] }
  0x61   :  { %869 = vmatpush.bf16.msra.mxu1 %v2562_v57 }
  0x62   :  { %882 = vmatpush.bf16.msra.mxu2 %v2626_v7 }
  0x63   :  { %894 = vmatpush.bf16.msra.mxu3 %v2698_v1  ;;  %857 = vmatmul.bf16.vlgmr.msra.gmra.mxu0 %v4134_v5  ;;  %v3604_v5 = vld [vmem:[%s5282_s1 + $0x2c4] sm:$0xf] }
  0x64   :  { %901 = vmatpush.bf16.msrb.mxu0 %v2810_v58  ;;  %870 = vmatmul.bf16.vlgmr.msra.gmra.mxu1 %v4105_v54  ;;  %v2847_v54 = vld [vmem:[%s5282_s1 + $0x348] sm:$0xf0]  ;;  %v2786_v19 = vor.u32 %v3604_v5, %v2783_v17 }
  0x65   :  { %914 = vmatpush.bf16.msrb.mxu1 %v2874_v61  ;;  %883 = vmatmul.bf16.vlgmr.msra.gmra.mxu2 %v4148_v13  ;;  %v2850_v20 = vor.u32 %v3620_v18, %v2847_v54  ;;  %v2775_v13 = vld [vmem:[%s5282_s1 + $0x2b8] sm:$0xf0]  ;;  %v3641_v5 = vld [vmem:[%s5284_s3 + $0x68] sm:$0xff] }
  0x66   :  { %1076 = vmatpush.bf16.msrb.mxu2 %v3635_v46 }
  0x67   :  { %895 = vmatpush.bf16.msra.mxu3 %v2690_v11 }
  0x68   :  { %902 = vmatpush.bf16.msrb.mxu0 %v2802_v8  ;;  %v2875_v8 = vld [vmem:[%s5285_s2 + $0x1] ss:$2 sm:$0x3] }
  0x69   :  { %915 = vmatpush.bf16.msrb.mxu1 %v2866_v9  ;;  %v929_v9 = vperm.slane %v927_v6, 0  ;;  %v938_v11 = vperm.slane %v2875_v8, 0 }
  0x6a   :  { %896 = vmatmul.bf16.vlgmr.msra.gmra.mxu3 %v4294_v27  ;;  %v2778_v27 = vor.u32 %v3602_v21, %v2775_v13  ;;  %1077 = vmatpush.bf16.msrb.mxu2 %v3634_v47  ;;  %v3639_v13 = vld [vmem:[%s5284_s3 + $0x58] sm:$0xff] }
  0x6b   :  { %1089 = vmatpush.bf16.msrb.mxu3 %v3643_v2  ;;  %v3654_v2 = vld [vmem:[%s5289_s7 + $0x10] sm:$0xff] }
  0x6c   :  { %903 = vmatpush.bf16.msrb.mxu0 %v2794_v15  ;;  %v3642_v15 = vld [vmem:[%s5284_s3 + $0x70] sm:$0xff] }
  0x6d   :  { %916 = vmatpush.bf16.msrb.mxu1 %v2858_v16 }
  0x6e   :  { %1078 = vmatpush.bf16.msrb.mxu2 %v3633_v48 }
  0x6f   :  { %1090 = vmatpush.bf16.msrb.mxu3 %v3642_v15  ;;  %v3652_v15 = vld [vmem:[%s5289_s7] sm:$0xff] }
  0x70   :  { %904 = vmatpush.bf16.msrb.mxu0 %v2786_v19  ;;  %v3640_v19 = vld [vmem:[%s5284_s3 + $0x60] sm:$0xff] }
  0x71   :  { %917 = vmatpush.bf16.msrb.mxu1 %v2850_v20 }
  0x73   :  { %1091 = vmatpush.bf16.msrb.mxu3 %v3641_v5  ;;  %v3720_v5 = vld [vmem:[%s5291_s9 + $0x1dc] sm:$0xf0] }
  0x74   :  { %905 = vmatpush.bf16.msrb.mxu0 %v2778_v27 }
  0x75   :  { %918 = vmatpush.bf16.msrb.mxu1 %v2842_v24 }
  0x77   :  { %1092 = vmatpush.bf16.msrb.mxu3 %v3640_v19  ;;  %v3238_v19 = vld [vmem:[%s5291_s9 + $0x1c8] sm:$0xf] }
  0x78   :  { %906 = vmatpush.bf16.msrb.mxu0 %v2770_v31 }
  0x79   :  { %919 = vmatpush.bf16.msrb.mxu1 %v2834_v33 }
  0x7b   :  { %1093 = vmatpush.bf16.msrb.mxu3 %v3639_v13 }
  0x7c   :  { %907 = vmatpush.bf16.msrb.mxu0 %v2762_v38 }
  0x7d   :  { %920 = vmatpush.bf16.msrb.mxu1 %v2826_v39 }
  0x7f   :  { %1094 = vmatpush.bf16.msrb.mxu3 %v3638_v23  ;;  %v3240_v23 = vld [vmem:[%s5291_s9 + $0x1e8] sm:$0xf0] }
  0x80   :  { %908 = vmatpush.bf16.msrb.mxu0 %v2754_v44 }
  0x81   :  { %921 = vmatpush.bf16.msrb.mxu1 %v2818_v45  ;;  %v939_v45 = vperm.slane %v2875_v8, 1  ;;  %v3789_v8 = vld [vmem:[%s5286_s4 + $0x1] ss:$0 sm:$0xff] }
  0x83   :  { %909 = vmatmul.bf16.vlgmr.msrb.gmra.mxu0 %v4299_v29  ;;  %v3632_v29 = vld [vmem:[%s5284_s3 + $0x20] sm:$0xff]  ;;  %1095 = vmatpush.bf16.msrb.mxu3 %v3637_v25 }
  0x84   :  { %922 = vmatmul.bf16.vlgmr.msrb.gmra.mxu1 %v4307_v32  ;;  %1079 = vmatpush.bf16.msrb.mxu2 %v3632_v29  ;;  %v3631_v32 = vld [vmem:[%s5284_s3 + $0x18] sm:$0xff]  ;;  %v3712_v25 = vld [vmem:[%s5291_s9 + $0x19c] sm:$0xf0] }
  0x87   :  { %1096 = vmatpush.bf16.msrb.mxu3 %v3636_v26  ;;  %v3708_v26 = vld [vmem:[%s5291_s9 + $0x184] sm:$0xf] }
  0x88   :  { %1080 = vmatpush.bf16.msrb.mxu2 %v3631_v32 }
  0x8c   :  { %1081 = vmatpush.bf16.msrb.mxu2 %v3630_v49 }
  0x90   :  { %1082 = vmatpush.bf16.msrb.mxu2 %v3629_v53  ;;  %v3648_v53 = vld [vmem:[%s5288_s5 + $0x20] sm:$0xff] }
  0x94   :  { %1083 = vmatpush.bf16.msrb.mxu2 %v3628_v55  ;;  %v3647_v55 = vld [vmem:[%s5288_s5 + $0x18] sm:$0xff] }
  0xa0   :  { %v754_v50 = vpop.f32.mrf.mxu0 }
  0xa1   :  { %v767_v51 = vpop.f32.mrf.mxu1 }
  0xa2   :  { %v768_v60 = vadd.f32 %v767_v51, %v754_v50  ;;  %v3651_v50 = vld [vmem:[%s5288_s5 + $0x38] sm:$0xff]  ;;  %v3650_v51 = vld [vmem:[%s5288_s5 + $0x30] sm:$0xff] }
  0xa3   :  { %1174 = vmatpush.bf16.msra.mxu0 %v3651_v50  ;;  %v3692_v50 = vld [vmem:[%s5291_s9 + $0x104] sm:$0xf] }
  0xa7   :  { %1175 = vmatpush.bf16.msra.mxu0 %v3650_v51 }
  0xa8   :  { %v780_v52 = vpop.f32.mrf.mxu2  ;;  %v756_v56 = vpop.f32.mrf.mxu0 }
  0xa9   :  { %v769_v57 = vpop.f32.mrf.mxu1  ;;  %v781_v62 = vadd.f32 %v780_v52, %v768_v60  ;;  %v3649_v52 = vld [vmem:[%s5288_s5 + $0x28] sm:$0xff]  ;;  %v3644_v60 = vld [vmem:[%s5288_s5] sm:$0xff] }
  0xab   :  { %1176 = vmatpush.bf16.msra.mxu0 %v3649_v52  ;;  %v3136_v52 = vld [vmem:[%s5291_s9 + $0x120] sm:$0xf0] }
  0xad   :  { %v793_v58 = vpop.f32.mrf.mxu3 }
  0xae   :  { %v794_v63 = vadd.f32 %v793_v58, %v781_v62  ;;  %v3646_v58 = vld [vmem:[%s5288_s5 + $0x10] sm:$0xff] }
  0xaf   :  { %1177 = vmatpush.bf16.msra.mxu0 %v3648_v53  ;;  %v3658_v62 = vld [vmem:[%s5289_s7 + $0x30] sm:$0xff]  ;;  %v3142_v53 = vld [vmem:[%s5291_s9 + $0x108] sm:$0xf] }
  0xb0   :  { %v782_v59 = vpop.f32.mrf.mxu2 }
  0xb1   :  { %v3645_v59 = vld [vmem:[%s5288_s5 + $0x8] sm:$0xff] }
  0xb3   :  { %1178 = vmatpush.bf16.msra.mxu0 %v3647_v55  ;;  %v3697_v55 = vld [vmem:[%s5291_s9 + $0x124] sm:$0xf0] }
  0xb5   :  { %v795_v61 = vpop.f32.mrf.mxu3 }
  0xb6   :  { %v3659_v61 = vld [vmem:[%s5289_s7 + $0x38] sm:$0xff] }
  0xb7   :  { %1179 = vmatpush.bf16.msra.mxu0 %v3646_v58  ;;  %1259 = vmatpush.bf16.msra.mxu1 %v3659_v61  ;;  %v3102_v61 = vld [vmem:[%s5291_s9 + $0xc0] sm:$0xf] }
  0xbb   :  { %1180 = vmatpush.bf16.msra.mxu0 %v3645_v59  ;;  %1260 = vmatpush.bf16.msra.mxu1 %v3658_v62  ;;  %v3139_v59 = vor.u32 %v3692_v50, %v3136_v52  ;;  %v3688_v62 = vld [vmem:[%s5291_s9 + $0xdc] sm:$0xf0]  ;;  %v3248_v50 = vld [vmem:[%s5291_s9 + $0x1f0] sm:$0xf0]  ;;  %v3723_v52 = vld [vmem:[%s5291_s9 + $0x1f4] sm:$0xf0] }
  0xbf   :  { %1181 = vmatpush.bf16.msra.mxu0 %v3644_v60  ;;  %v3143_v60 = vor.u32 %v3697_v55, %v3142_v53 }
  0xc0   :  { %v806_v0 = vpop.f32.mrf.mxu0 }
  0xc1   :  { %v819_v1 = vpop.f32.mrf.mxu1  ;;  %v807_v3 = vadd.f32 %v806_v0, %v794_v63  ;;  %v3657_v63 = vld [vmem:[%s5289_s7 + $0x28] sm:$0xff]  ;;  %v3656_v0 = vld [vmem:[%s5289_s7 + $0x20] sm:$0xff] }
  0xc2   :  { %1261 = vmatpush.bf16.msra.mxu1 %v3657_v63  ;;  %v3684_v63 = vld [vmem:[%s5291_s9 + $0xc4] sm:$0xf] }
  0xc3   :  { %v820_v7 = vadd.f32 %v819_v1, %v807_v3  ;;  %v3655_v1 = vld [vmem:[%s5289_s7 + $0x18] sm:$0xff]  ;;  %v3788_v3 = vld [vmem:[%s5286_s4] ss:$0 sm:$0xff] }
  0xc6   :  { %1262 = vmatpush.bf16.msra.mxu1 %v3656_v0 }
  0xc8   :  { %v832_v10 = vpop.f32.mrf.mxu2  ;;  %v808_v12 = vpop.f32.mrf.mxu0 }
  0xc9   :  { %v833_v4 = vadd.f32 %v832_v10, %v820_v7  ;;  %v821_v14 = vpop.f32.mrf.mxu1 }
  0xca   :  { %1263 = vmatpush.bf16.msra.mxu1 %v3655_v1  ;;  %v3653_v14 = vld [vmem:[%s5289_s7 + $0x8] sm:$0xff]  ;;  %v3104_v1 = vld [vmem:[%s5291_s9 + $0xe0] sm:$0xf0] }
  0xcb   :  { %v933_v16 = vmul.f32 %v929_v9, %v833_v4 }
  0xcd   :  { %v942_v17 = vadd.f32 %v938_v11, %v933_v16  ;;  %v845_v18 = vpop.f32.mrf.mxu3  ;;  %v3230_v16 = vld [vmem:[%s5291_s9 + $0x1c0] sm:$0xf] }
  0xce   :  { %1264 = vmatpush.bf16.msra.mxu1 %v3654_v2  ;;  %v3110_v2 = vld [vmem:[%s5291_s9 + $0xc8] sm:$0xf] }
  0xcf   :  { %v944_v54 = vmax.f32 %v942_v17, 0.0  ;;  %v3716_v17 = vld [vmem:[%s5291_s9 + $0x1c4] sm:$0xf] }
  0xd0   :  { %v834_v20 = vpop.f32.mrf.mxu2 }
  0xd1   :  { %v946_v21 = vpack.c.bf16 %v944_v54, %v944_v54  ;;  %v3232_v54 = vld [vmem:[%s5291_s9 + $0x1e0] sm:$0xf0]  ;;  %v3721_v20 = vld [vmem:[%s5291_s9 + $0x1e4] sm:$0xf0] }
  0xd2   :  { %1265 = vmatpush.bf16.msra.mxu1 %v3653_v14  ;;  %v3239_v13 = vor.u32 %v3721_v20, %v3238_v19 }
  0xd3   :  { %1084 = vmatmul.bf16.vlgmr.msrb.gmra.mxu2 %v946_v21  ;;  %v3235_v21 = vor.u32 %v3716_v17, %v3232_v54  ;;  %v3677_v17 = vld [vmem:[%s5291_s9 + $0x8c] sm:$0xf]  ;;  %v3790_v54 = vld [vmem:[%s5287_s6] ss:$0 sm:$0xff] }
  0xd4   :  { %1708 = vmatpush.bf16.msrb.mxu0 %v3239_v13  ;;  %v3038_v13 = vld [vmem:[%s5291_s9 + $0x40] sm:$0xf] }
  0xd5   :  { %v847_v22 = vpop.f32.mrf.mxu3  ;;  %1695 = vmatpush.bf16.msra.mxu3 %v3235_v21 }
  0xd6   :  { %1266 = vmatpush.bf16.msra.mxu1 %v3652_v15  ;;  %v3717_v22 = vld [vmem:[%s5291_s9 + $0x1cc] sm:$0xf]  ;;  %v3072_v15 = vld [vmem:[%s5291_s9 + $0xa0] sm:$0xf0] }
  0xe0   :  { %v858_v27 = vpop.f32.mrf.mxu0 }
  0xe1   :  { %v871_v24 = vpop.f32.mrf.mxu1  ;;  %v859_v34 = vadd.f32 %v858_v27, %v845_v18  ;;  %v3231_v18 = vor.u32 %v3720_v5, %v3230_v16  ;;  %v3198_v27 = vld [vmem:[%s5291_s9 + $0x180] sm:$0xf]  ;;  %v3078_v16 = vld [vmem:[%s5291_s9 + $0x88] sm:$0xf] }
  0xe2   :  { %v3681_v5 = vld [vmem:[%s5291_s9 + $0xa4] sm:$0xf0] }
  0xe3   :  { %v872_v36 = vadd.f32 %v871_v24, %v859_v34  ;;  %1682 = vmatpush.bf16.msra.mxu2 %v3231_v18  ;;  %v3243_v24 = vor.u32 %v3717_v22, %v3240_v23  ;;  %v3713_v34 = vld [vmem:[%s5291_s9 + $0x1a4] sm:$0xf0]  ;;  %v3080_v18 = vld [vmem:[%s5291_s9 + $0xa8] sm:$0xf0]  ;;  %v3079_v21 = vor.u32 %v3681_v5, %v3078_v16  ;;  %v3672_v22 = vld [vmem:[%s5291_s9 + $0x5c] sm:$0xf0] }
  0xe4   :  { %v3668_v23 = vld [vmem:[%s5291_s9 + $0x44] sm:$0xf]  ;;  %v3182_v16 = vld [vmem:[%s5291_s9 + $0x150] sm:$0xf] }
  0xe5   :  { %1721 = vmatpush.bf16.msrb.mxu1 %v3243_v24  ;;  %v3040_v24 = vld [vmem:[%s5291_s9 + $0x60] sm:$0xf0]  ;;  %v3706_v5 = vld [vmem:[%s5291_s9 + $0x16c] sm:$0xf0] }
  0xe8   :  { %v860_v28 = vpop.f32.mrf.mxu0  ;;  %v884_v31 = vpop.f32.mrf.mxu2 }
  0xe9   :  { %v873_v30 = vpop.f32.mrf.mxu1  ;;  %v885_v38 = vadd.f32 %v884_v31, %v872_v36  ;;  %v3200_v28 = vld [vmem:[%s5291_s9 + $0x1a0] sm:$0xf0] }
  0xea   :  { %v3199_v30 = vor.u32 %v3712_v25, %v3198_v27  ;;  %v3203_v31 = vor.u32 %v3708_v26, %v3200_v28  ;;  %v3083_v27 = vor.u32 %v3677_v17, %v3080_v18  ;;  %v3046_v25 = vld [vmem:[%s5291_s9 + $0x48] sm:$0xf]  ;;  %v3791_v28 = vld [vmem:[%s5287_s6 + $0x1] ss:$0 sm:$0xff]  ;;  %v3183_v17 = vor.u32 %v3706_v5, %v3182_v16  ;;  %v3702_v18 = vld [vmem:[%s5291_s9 + $0x154] sm:$0xf] }
  0xeb   :  { %v3673_v26 = vld [vmem:[%s5291_s9 + $0x64] sm:$0xf0]  ;;  %v3030_v16 = vld [vmem:[%s5291_s9 + $0x18] sm:$0xf] }
  0xec   :  { %1683 = vmatpush.bf16.msra.mxu2 %v3199_v30  ;;  %1696 = vmatpush.bf16.msra.mxu3 %v3203_v31  ;;  %v3669_v30 = vld [vmem:[%s5291_s9 + $0x4c] sm:$0xf]  ;;  %v3667_v5 = vld [vmem:[%s5291_s9 + $0x34] sm:$0xf0] }
  0xed   :  { %v897_v33 = vpop.f32.mrf.mxu3  ;;  %v3048_v31 = vld [vmem:[%s5291_s9 + $0x68] sm:$0xf0] }
  0xee   :  { %v898_v39 = vadd.f32 %v897_v33, %v885_v38  ;;  %v3206_v33 = vld [vmem:[%s5291_s9 + $0x188] sm:$0xf]  ;;  %v3166_v38 = vld [vmem:[%s5291_s9 + $0x140] sm:$0xf] }
  0xef   :  { %v3207_v36 = vor.u32 %v3713_v34, %v3206_v33  ;;  %v3039_v34 = vor.u32 %v3672_v22, %v3038_v13  ;;  %v3703_v13 = vld [vmem:[%s5291_s9 + $0x15c] sm:$0xf] }
  0xf0   :  { %v886_v35 = vpop.f32.mrf.mxu2 }
  0xf1   :  { %v3709_v35 = vld [vmem:[%s5291_s9 + $0x18c] sm:$0xf]  ;;  %1709 = vmatpush.bf16.msrb.mxu0 %v3207_v36  ;;  %v3664_v36 = vld [vmem:[%s5291_s9 + $0x1c] sm:$0xf0] }
  0xf5   :  { %v899_v37 = vpop.f32.mrf.mxu3 }
  0xf6   :  { %v3208_v37 = vld [vmem:[%s5291_s9 + $0x1a8] sm:$0xf0] }
 0x100   :  { %v910_v40 = vpop.f32.mrf.mxu0 }
 0x101   :  { %v911_v41 = vadd.f32 %v910_v40, %v898_v39  ;;  %v923_v42 = vpop.f32.mrf.mxu1  ;;  %v3704_v39 = vld [vmem:[%s5291_s9 + $0x15c] sm:$0xf0]  ;;  %v3211_v40 = vor.u32 %v3709_v35, %v3208_v37 }
 0x102   :  { %v3006_v35 = vld [vmem:[%s5291_s9] sm:$0xf] }
 0x103   :  { %v924_v44 = vadd.f32 %v923_v42, %v911_v41  ;;  %v3700_v41 = vld [vmem:[%s5291_s9 + $0x144] sm:$0xf]  ;;  %1722 = vmatpush.bf16.msrb.mxu1 %v3211_v40 }
 0x104   :  { %v3168_v42 = vld [vmem:[%s5291_s9 + $0x160] sm:$0xf0] }
 0x105   :  { %v934_v46 = vmul.f32 %v930_v43, %v924_v44  ;;  %v3174_v43 = vld [vmem:[%s5291_s9 + $0x148] sm:$0xf]  ;;  %v3167_v44 = vor.u32 %v3704_v39, %v3166_v38  ;;  %v3043_v38 = vor.u32 %v3668_v23, %v3040_v24  ;;  %v3047_v39 = vor.u32 %v3673_v26, %v3046_v25  ;;  %v3660_v40 = vld [vmem:[%s5291_s9 + $0x4] sm:$0xf]  ;;  %v3192_v23 = vld [vmem:[%s5291_s9 + $0x178] sm:$0xf0] }
 0x106   :  { %v3150_v24 = vld [vmem:[%s5291_s9 + $0x110] sm:$0xf]  ;;  %v3694_v26 = vld [vmem:[%s5291_s9 + $0x114] sm:$0xf] }
 0x107   :  { %v943_v47 = vadd.f32 %v939_v45, %v934_v46  ;;  %v3705_v45 = vld [vmem:[%s5291_s9 + $0x164] sm:$0xf0]  ;;  %v3701_v46 = vld [vmem:[%s5291_s9 + $0x14c] sm:$0xf]  ;;  %1684 = vmatpush.bf16.msra.mxu2 %v3167_v44  ;;  %v3698_v25 = vld [vmem:[%s5291_s9 + $0x12c] sm:$0xf0] }
 0x108   :  { %v912_v48 = vpop.f32.mrf.mxu0  ;;  %v3665_v44 = vld [vmem:[%s5291_s9 + $0x24] sm:$0xf0] }
 0x109   :  { %v945_v29 = vmax.f32 %v943_v47, 0.0  ;;  %v925_v32 = vpop.f32.mrf.mxu1  ;;  %v3176_v47 = vld [vmem:[%s5291_s9 + $0x168] sm:$0xf0]  ;;  %v3171_v48 = vor.u32 %v3700_v41, %v3168_v42  ;;  %v3008_v41 = vld [vmem:[%s5291_s9 + $0x20] sm:$0xf0] }
 0x10a   :  { %v3134_v32 = vld [vmem:[%s5291_s9 + $0x100] sm:$0xf]  ;;  %v3179_v51 = vor.u32 %v3701_v46, %v3176_v47  ;;  %v3014_v42 = vld [vmem:[%s5291_s9 + $0x8] sm:$0xf]  ;;  %v3016_v46 = vld [vmem:[%s5291_s9 + $0x28] sm:$0xf0]  ;;  %v3011_v55 = vor.u32 %v3660_v40, %v3008_v41 }
 0x10b   :  { %v947_v49 = vpack.c.bf16 %v945_v29, %v945_v29  ;;  %v3175_v29 = vor.u32 %v3705_v45, %v3174_v43  ;;  %1697 = vmatpush.bf16.msra.mxu3 %v3171_v48  ;;  %v3051_v43 = vor.u32 %v3669_v30, %v3048_v31  ;;  %v3661_v45 = vld [vmem:[%s5291_s9 + $0xc] sm:$0xf]  ;;  %v3246_v48 = vld [vmem:[%s5291_s9 + $0x1d0] sm:$0xf]  ;;  %v3152_v30 = vld [vmem:[%s5291_s9 + $0x130] sm:$0xf0] }
 0x10c   :  { %1723 = vmatpush.bf16.msrb.mxu1 %v3179_v51  ;;  %v3254_v51 = vld [vmem:[%s5291_s9 + $0x1d8] sm:$0xf]  ;;  %v3690_v40 = vld [vmem:[%s5291_s9 + $0xec] sm:$0xf0]  ;;  %v3686_v41 = vld [vmem:[%s5291_s9 + $0xd4] sm:$0xf] }
 0x10d   :  { %1097 = vmatmul.bf16.vlgmr.msrb.gmra.mxu3 %v947_v49  ;;  %v3696_v49 = vld [vmem:[%s5291_s9 + $0x11c] sm:$0xf0]  ;;  %1710 = vmatpush.bf16.msrb.mxu0 %v3175_v29  ;;  %v3722_v29 = vld [vmem:[%s5291_s9 + $0x1ec] sm:$0xf0]  ;;  %v3158_v31 = vld [vmem:[%s5291_s9 + $0x118] sm:$0xf] }
 0x10e   :  { %v3135_v58 = vor.u32 %v3696_v49, %v3134_v32  ;;  %v3718_v32 = vld [vmem:[%s5291_s9 + $0x1d4] sm:$0xf]  ;;  %v3007_v49 = vor.u32 %v3664_v36, %v3006_v35  ;;  %v3695_v36 = vld [vmem:[%s5291_s9 + $0x11c] sm:$0xf] }
 0x10f   :  { %1698 = vmatpush.bf16.msra.mxu3 %v3139_v59  ;;  %v3019_v59 = vor.u32 %v3661_v45, %v3016_v46  ;;  %v3691_v45 = vld [vmem:[%s5291_s9 + $0xf4] sm:$0xf0] }
 0x110   :  { %1685 = vmatpush.bf16.msra.mxu2 %v3135_v58  ;;  %v3015_v58 = vor.u32 %v3665_v44, %v3014_v42  ;;  %v3126_v44 = vld [vmem:[%s5291_s9 + $0xd8] sm:$0xf] }
 0x111   :  { %1711 = vmatpush.bf16.msrb.mxu0 %v3143_v60 }
 0x156   :  { %v1085_v56 = vpop.f32.mrf.mxu2 }
 0x15e   :  { %v1087_v57 = vpop.f32.mrf.mxu2 }
 0x15f   :  { %v3144_v57 = vld [vmem:[%s5291_s9 + $0x128] sm:$0xf0] }
 0x190   :  { %v1098_v6 = vpop.f32.mrf.mxu3 }
 0x191   :  { %v1099_v7 = vadd.f32 %v1098_v6, %v1085_v56  ;;  %v3693_v56 = vld [vmem:[%s5291_s9 + $0x10c] sm:$0xf] }
 0x192   :  { %v3147_v0 = vor.u32 %v3693_v56, %v3144_v57  ;;  %v3685_v6 = vld [vmem:[%s5291_s9 + $0xcc] sm:$0xf]  ;;  %v3719_v56 = vld [vmem:[%s5291_s9 + $0x1dc] sm:$0xf] }
 0x193   :  { %v1104_v9 = vmul.f32 %v3788_v3, %v1099_v7  ;;  %v3689_v3 = vld [vmem:[%s5291_s9 + $0xe4] sm:$0xf0]  ;;  %v3112_v7 = vld [vmem:[%s5291_s9 + $0xe8] sm:$0xf0]  ;;  %v3256_v57 = vld [vmem:[%s5291_s9 + $0x1f8] sm:$0xf0] }
 0x194   :  { %1724 = vmatpush.bf16.msrb.mxu1 %v3147_v0  ;;  %v3115_v14 = vor.u32 %v3685_v6, %v3112_v7  ;;  %v3714_v0 = vld [vmem:[%s5291_s9 + $0x1ac] sm:$0xf0]  ;;  %v3710_v6 = vld [vmem:[%s5291_s9 + $0x194] sm:$0xf] }
 0x195   :  { %v1107_v10 = vadd.f32 %v3789_v8, %v1104_v9  ;;  %v3103_v8 = vor.u32 %v3688_v62, %v3102_v61  ;;  %v3107_v9 = vor.u32 %v3684_v63, %v3104_v1  ;;  %v3247_v61 = vor.u32 %v3722_v29, %v3246_v48  ;;  %v3214_v63 = vld [vmem:[%s5291_s9 + $0x190] sm:$0xf]  ;;  %v3216_v7 = vld [vmem:[%s5291_s9 + $0x1b0] sm:$0xf0]  ;;  %v3687_v48 = vld [vmem:[%s5291_s9 + $0xdc] sm:$0xf] }
 0x196   :  { %v3251_v62 = vor.u32 %v3718_v32, %v3248_v50  ;;  %v3128_v29 = vld [vmem:[%s5291_s9 + $0xf8] sm:$0xf0]  ;;  %v3086_v32 = vld [vmem:[%s5291_s9 + $0x90] sm:$0xf] }
 0x197   :  { %v1108_v4 = vmax.f32 %v1107_v10, 0.0  ;;  %v3111_v10 = vor.u32 %v3689_v3, %v3110_v2  ;;  %1686 = vmatpush.bf16.msra.mxu2 %v3103_v8  ;;  %1699 = vmatpush.bf16.msra.mxu3 %v3107_v9  ;;  %v3255_v2 = vor.u32 %v3723_v52, %v3254_v51  ;;  %v3259_v3 = vor.u32 %v3719_v56, %v3256_v57  ;;  %v3222_v8 = vld [vmem:[%s5291_s9 + $0x198] sm:$0xf]  ;;  %v3682_v50 = vld [vmem:[%s5291_s9 + $0xac] sm:$0xf0] }
 0x198   :  { %v1100_v11 = vpop.f32.mrf.mxu3  ;;  %1725 = vmatpush.bf16.msrb.mxu1 %v3115_v14  ;;  %v3715_v9 = vld [vmem:[%s5291_s9 + $0x1b4] sm:$0xf0]  ;;  %v3678_v51 = vld [vmem:[%s5291_s9 + $0x94] sm:$0xf] }
 0x199   :  { %v1109_v12 = vpack.c.bf16 %v1108_v4, %v1108_v4  ;;  %v3070_v4 = vld [vmem:[%s5291_s9 + $0x80] sm:$0xf]  ;;  %1712 = vmatpush.bf16.msrb.mxu0 %v3111_v10  ;;  %v3711_v10 = vld [vmem:[%s5291_s9 + $0x19c] sm:$0xf]  ;;  %v3223_v14 = vor.u32 %v3715_v9, %v3222_v8  ;;  %v3088_v52 = vld [vmem:[%s5291_s9 + $0xb0] sm:$0xf0] }
 0x19a   :  { %v3680_v11 = vld [vmem:[%s5291_s9 + $0x9c] sm:$0xf0]  ;;  %v3094_v56 = vld [vmem:[%s5291_s9 + $0x98] sm:$0xf]  ;;  %v3064_v8 = vld [vmem:[%s5291_s9 + $0x78] sm:$0xf0] }
 0x19b   :  { %1182 = vmatmul.bf16.vlgmr.msra.gmra.mxu0 %v1109_v12  ;;  %v3676_v12 = vld [vmem:[%s5291_s9 + $0x84] sm:$0xf]  ;;  %v3071_v19 = vor.u32 %v3680_v11, %v3070_v4  ;;  %v3224_v4 = vld [vmem:[%s5291_s9 + $0x1b8] sm:$0xf0]  ;;  %v3215_v11 = vor.u32 %v3714_v0, %v3214_v63  ;;  %v3683_v57 = vld [vmem:[%s5291_s9 + $0xb4] sm:$0xf0] }
 0x19c   :  { %v3075_v20 = vor.u32 %v3676_v12, %v3072_v15  ;;  %1726 = vmatpush.bf16.msrb.mxu1 %v3083_v27  ;;  %v3219_v12 = vor.u32 %v3710_v6, %v3216_v7  ;;  %v3227_v15 = vor.u32 %v3711_v10, %v3224_v4  ;;  %v3195_v27 = vor.u32 %v3703_v13, %v3192_v23  ;;  %v3670_v0 = vld [vmem:[%s5291_s9 + $0x54] sm:$0xf]  ;;  %v3675_v6 = vld [vmem:[%s5291_s9 + $0x74] sm:$0xf0]  ;;  %v3671_v7 = vld [vmem:[%s5291_s9 + $0x5c] sm:$0xf] }
 0x19d   :  { %1687 = vmatpush.bf16.msra.mxu2 %v3071_v19  ;;  %1713 = vmatpush.bf16.msrb.mxu0 %v3079_v21  ;;  %v3707_v21 = vld [vmem:[%s5291_s9 + $0x174] sm:$0xf0]  ;;  %v3022_v10 = vld [vmem:[%s5291_s9 + $0x10] sm:$0xf]  ;;  %v3792_v13 = vld [vmem:[%s5290_s8] ss:$0 sm:$0xff] }
 0x19e   :  { %1700 = vmatpush.bf16.msra.mxu3 %v3075_v20  ;;  %v3190_v20 = vld [vmem:[%s5291_s9 + $0x158] sm:$0xf]  ;;  %v3666_v4 = vld [vmem:[%s5291_s9 + $0x2c] sm:$0xf0] }
 0x19f   :  { %v3191_v22 = vor.u32 %v3707_v21, %v3190_v20  ;;  %v3031_v20 = vor.u32 %v3667_v5, %v3030_v16  ;;  %v3760_v16 = vld [vmem:[%s5292_s11 + $0x120] sm:$0xff] }
 0x1a0   :  { %1727 = vmatpush.bf16.msrb.mxu1 %v3051_v43  ;;  %v3120_v43 = vld [vmem:[%s5291_s9 + $0xf0] sm:$0xf0]  ;;  %v3768_v5 = vld [vmem:[%s5292_s11 + $0x160] sm:$0xff] }
 0x1a1   :  { %1688 = vmatpush.bf16.msra.mxu2 %v3039_v34  ;;  %1714 = vmatpush.bf16.msrb.mxu0 %v3047_v39  ;;  %v3155_v34 = vor.u32 %v3694_v26, %v3152_v30  ;;  %v3118_v39 = vld [vmem:[%s5291_s9 + $0xd0] sm:$0xf]  ;;  %v3123_v46 = vor.u32 %v3686_v41, %v3120_v43  ;;  %v3755_v30 = vld [vmem:[%s5292_s11 + $0xf8] sm:$0xff]  ;;  %v3729_v41 = vld [vmem:[%s5292_s11 + $0x28] sm:$0xff] }
 0x1a2   :  { %1701 = vmatpush.bf16.msra.mxu3 %v3043_v38  ;;  %v3119_v42 = vor.u32 %v3690_v40, %v3118_v39  ;;  %v3745_v39 = vld [vmem:[%s5292_s11 + $0xa8] sm:$0xff]  ;;  %v3744_v43 = vld [vmem:[%s5292_s11 + $0xa0] sm:$0xff] }
 0x1a3   :  { %v3753_v40 = vld [vmem:[%s5292_s11 + $0xe8] sm:$0xff] }
 0x1a4   :  { %1728 = vmatpush.bf16.msrb.mxu1 %v3019_v59  ;;  %v3095_v59 = vor.u32 %v3683_v57, %v3094_v56  ;;  %v3725_v56 = vld [vmem:[%s5292_s11 + $0x8] sm:$0xff] }
 0x1a5   :  { %1689 = vmatpush.bf16.msra.mxu2 %v3007_v49  ;;  %1715 = vmatpush.bf16.msrb.mxu0 %v3015_v58  ;;  %v3131_v49 = vor.u32 %v3687_v48, %v3128_v29  ;;  %v3679_v58 = vld [vmem:[%s5291_s9 + $0x9c] sm:$0xf]  ;;  %v3733_v57 = vld [vmem:[%s5292_s11 + $0x48] sm:$0xff] }
 0x1a6   :  { %1702 = vmatpush.bf16.msra.mxu3 %v3011_v55  ;;  %v3091_v55 = vor.u32 %v3678_v51, %v3088_v52  ;;  %v3751_v48 = vld [vmem:[%s5292_s11 + $0xd8] sm:$0xff]  ;;  %v3726_v51 = vld [vmem:[%s5292_s11 + $0x10] sm:$0xff] }
 0x1a7   :  { %v3727_v29 = vld [vmem:[%s5292_s11 + $0x18] sm:$0xff]  ;;  %v3734_v52 = vld [vmem:[%s5292_s11 + $0x50] sm:$0xff] }
 0x1a9   :  { %1734 = vmatpush.bf16.msrb.mxu2 %v3247_v61  ;;  %1760 = vmatpush.bf16.msra.mxu0 %v3255_v2  ;;  %v3054_v61 = vld [vmem:[%s5291_s9 + $0x50] sm:$0xf]  ;;  %v3062_v2 = vld [vmem:[%s5291_s9 + $0x58] sm:$0xf] }
 0x1aa   :  { %1747 = vmatpush.bf16.msrb.mxu3 %v3251_v62  ;;  %v3674_v62 = vld [vmem:[%s5291_s9 + $0x6c] sm:$0xf0] }
 0x1ad   :  { %1735 = vmatpush.bf16.msrb.mxu2 %v3215_v11  ;;  %1761 = vmatpush.bf16.msra.mxu0 %v3223_v14  ;;  %v3063_v11 = vor.u32 %v3675_v6, %v3062_v2  ;;  %v3024_v14 = vld [vmem:[%s5291_s9 + $0x30] sm:$0xf0]  ;;  %v3777_v6 = vld [vmem:[%s5292_s11 + $0x1a8] sm:$0xff] }
 0x1ae   :  { %1748 = vmatpush.bf16.msrb.mxu3 %v3219_v12  ;;  %v3662_v12 = vld [vmem:[%s5291_s9 + $0x14] sm:$0xf] }
 0x1af   :  { %v3778_v2 = vld [vmem:[%s5292_s11 + $0x1b0] sm:$0xff] }
 0x1b1   :  { %1736 = vmatpush.bf16.msrb.mxu2 %v3183_v17  ;;  %1762 = vmatpush.bf16.msra.mxu0 %v3191_v22  ;;  %v3023_v17 = vor.u32 %v3666_v4, %v3022_v10  ;;  %v3793_v22 = vld [vmem:[%s5290_s8 + $0x1] ss:$0 sm:$0xff] }
 0x1b2   :  { %v3776_v10 = vld [vmem:[%s5292_s11 + $0x1a0] sm:$0xff] }
 0x1b3   :  { %v3784_v4 = vld [vmem:[%s5292_s11 + $0x1e0] sm:$0xff] }
 0x218   :  { %v1183_v33 = vpop.f32.mrf.mxu0 }
 0x219   :  { %v1189_v37 = vmul.f32 %v3790_v54, %v1183_v33  ;;  %v3184_v54 = vld [vmem:[%s5291_s9 + $0x170] sm:$0xf0]  ;;  %v3699_v33 = vld [vmem:[%s5291_s9 + $0x134] sm:$0xf0] }
 0x21a   :  { %v3187_v19 = vor.u32 %v3702_v18, %v3184_v54  ;;  %v3159_v35 = vor.u32 %v3699_v33, %v3158_v31  ;;  %v3663_v18 = vld [vmem:[%s5291_s9 + $0x1c] sm:$0xf] }
 0x21b   :  { %v1192_v47 = vadd.f32 %v3791_v28, %v1189_v37  ;;  %v3151_v28 = vor.u32 %v3698_v25, %v3150_v24  ;;  %v3160_v37 = vld [vmem:[%s5291_s9 + $0x138] sm:$0xf0] }
 0x21c   :  { %1749 = vmatpush.bf16.msrb.mxu3 %v3187_v19  ;;  %v3163_v38 = vor.u32 %v3695_v36, %v3160_v37  ;;  %1763 = vmatpush.bf16.msra.mxu0 %v3159_v35  ;;  %v3032_v54 = vld [vmem:[%s5291_s9 + $0x38] sm:$0xf0]  ;;  %v3027_v19 = vor.u32 %v3662_v12, %v3024_v14  ;;  %v3746_v35 = vld [vmem:[%s5292_s11 + $0xb0] sm:$0xff]  ;;  %v3769_v12 = vld [vmem:[%s5292_s11 + $0x168] sm:$0xff] }
 0x21d   :  { %v1193_v53 = vmax.f32 %v1192_v47, 0.0  ;;  %1737 = vmatpush.bf16.msrb.mxu2 %v3151_v28  ;;  %v3127_v47 = vor.u32 %v3691_v45, %v3126_v44  ;;  %v3035_v21 = vor.u32 %v3663_v18, %v3032_v54  ;;  %v3747_v28 = vld [vmem:[%s5292_s11 + $0xb8] sm:$0xff]  ;;  %v3754_v36 = vld [vmem:[%s5292_s11 + $0xf0] sm:$0xff]  ;;  %v3752_v44 = vld [vmem:[%s5292_s11 + $0xe0] sm:$0xff] }
 0x21e   :  { %v3731_v33 = vld [vmem:[%s5292_s11 + $0x38] sm:$0xff]  ;;  %v3730_v37 = vld [vmem:[%s5292_s11 + $0x30] sm:$0xff]  ;;  %v3728_v45 = vld [vmem:[%s5292_s11 + $0x20] sm:$0xff] }
 0x21f   :  { %v1194_v60 = vpack.c.bf16 %v1193_v53, %v1193_v53  ;;  %v3087_v53 = vor.u32 %v3682_v50, %v3086_v32  ;;  %v3735_v32 = vld [vmem:[%s5292_s11 + $0x58] sm:$0xff]  ;;  %v3750_v50 = vld [vmem:[%s5292_s11 + $0xd0] sm:$0xff] }
 0x220   :  { %v1185_v1 = vpop.f32.mrf.mxu0  ;;  %1750 = vmatpush.bf16.msrb.mxu3 %v3155_v34  ;;  %1764 = vmatpush.bf16.msra.mxu0 %v3127_v47  ;;  %v3739_v34 = vld [vmem:[%s5292_s11 + $0x78] sm:$0xff]  ;;  %v3782_v18 = vld [vmem:[%s5292_s11 + $0x1d0] sm:$0xff] }
 0x221   :  { %1267 = vmatmul.bf16.vlgmr.msra.gmra.mxu1 %v1194_v60  ;;  %1738 = vmatpush.bf16.msrb.mxu2 %v3119_v42  ;;  %v3096_v60 = vld [vmem:[%s5291_s9 + $0xb8] sm:$0xf0]  ;;  %v3056_v1 = vld [vmem:[%s5291_s9 + $0x70] sm:$0xf0]  ;;  %v3737_v42 = vld [vmem:[%s5292_s11 + $0x68] sm:$0xff] }
 0x222   :  { %1773 = vmatpush.bf16.msra.mxu1 %v3259_v3  ;;  %v3099_v63 = vor.u32 %v3679_v58, %v3096_v60  ;;  %v3055_v3 = vor.u32 %v3674_v62, %v3054_v61  ;;  %v3059_v9 = vor.u32 %v3670_v0, %v3056_v1  ;;  %v3743_v47 = vld [vmem:[%s5292_s11 + $0x98] sm:$0xff]  ;;  %v3740_v58 = vld [vmem:[%s5292_s11 + $0x80] sm:$0xff] }
 0x223   :  { %v3779_v60 = vld [vmem:[%s5292_s11 + $0x1b8] sm:$0xff]  ;;  %v3724_v62 = vld [vmem:[%s5292_s11] sm:$0xff] }
 0x224   :  { %1751 = vmatpush.bf16.msrb.mxu3 %v3123_v46  ;;  %1765 = vmatpush.bf16.msra.mxu0 %v3095_v59  ;;  %v3736_v46 = vld [vmem:[%s5292_s11 + $0x60] sm:$0xff]  ;;  %v3787_v61 = vld [vmem:[%s5292_s11 + $0x1f8] sm:$0xff] }
 0x225   :  { %1739 = vmatpush.bf16.msrb.mxu2 %v3087_v53  ;;  %v3741_v53 = vld [vmem:[%s5292_s11 + $0x88] sm:$0xff]  ;;  %v3748_v59 = vld [vmem:[%s5292_s11 + $0xc0] sm:$0xff]  ;;  %v3763_v0 = vld [vmem:[%s5292_s11 + $0x138] sm:$0xff] }
 0x226   :  { %1774 = vmatpush.bf16.msra.mxu1 %v3227_v15  ;;  %v3067_v15 = vor.u32 %v3671_v7, %v3064_v8  ;;  %v3771_v1 = vld [vmem:[%s5292_s11 + $0x178] sm:$0xff]  ;;  %v3785_v7 = vld [vmem:[%s5292_s11 + $0x1e8] sm:$0xff]  ;;  %v3762_v8 = vld [vmem:[%s5292_s11 + $0x130] sm:$0xff] }
 0x227   :  { %v3775_v14 = vld [vmem:[%s5292_s11 + $0x198] sm:$0xff] }
 0x228   :  { %1752 = vmatpush.bf16.msrb.mxu3 %v3091_v55  ;;  %1766 = vmatpush.bf16.msra.mxu0 %v3063_v11  ;;  %v3749_v55 = vld [vmem:[%s5292_s11 + $0xc8] sm:$0xff]  ;;  %v3759_v54 = vld [vmem:[%s5292_s11 + $0x118] sm:$0xff] }
 0x229   :  { %1740 = vmatpush.bf16.msrb.mxu2 %v3055_v3  ;;  %v3786_v3 = vld [vmem:[%s5292_s11 + $0x1f0] sm:$0xff]  ;;  %v3761_v11 = vld [vmem:[%s5292_s11 + $0x128] sm:$0xff] }
 0x22a   :  { %1775 = vmatpush.bf16.msra.mxu1 %v3195_v27 }
 0x22c   :  { %1753 = vmatpush.bf16.msrb.mxu3 %v3059_v9  ;;  %1767 = vmatpush.bf16.msra.mxu0 %v3031_v20  ;;  %v3770_v9 = vld [vmem:[%s5292_s11 + $0x170] sm:$0xff]  ;;  %v3773_v20 = vld [vmem:[%s5292_s11 + $0x188] sm:$0xff] }
 0x22d   :  { %1741 = vmatpush.bf16.msrb.mxu2 %v3023_v17  ;;  %v3774_v17 = vld [vmem:[%s5292_s11 + $0x190] sm:$0xff] }
 0x22e   :  { %1776 = vmatpush.bf16.msra.mxu1 %v3163_v38  ;;  %v3738_v38 = vld [vmem:[%s5292_s11 + $0x70] sm:$0xff] }
 0x230   :  { %1754 = vmatpush.bf16.msrb.mxu3 %v3027_v19  ;;  %v3767_v19 = vld [vmem:[%s5292_s11 + $0x158] sm:$0xff] }
 0x232   :  { %1777 = vmatpush.bf16.msra.mxu1 %v3131_v49  ;;  %v3742_v49 = vld [vmem:[%s5292_s11 + $0x90] sm:$0xff] }
 0x236   :  { %1778 = vmatpush.bf16.msra.mxu1 %v3099_v63  ;;  %v3732_v63 = vld [vmem:[%s5292_s11 + $0x40] sm:$0xff] }
 0x23a   :  { %1779 = vmatpush.bf16.msra.mxu1 %v3067_v15  ;;  %v3783_v15 = vld [vmem:[%s5292_s11 + $0x1d8] sm:$0xff] }
 0x23e   :  { %1780 = vmatpush.bf16.msra.mxu1 %v3035_v21  ;;  %v3781_v21 = vld [vmem:[%s5292_s11 + $0x1c8] sm:$0xff] }
 0x29e   :  { %v1268_v23 = vpop.f32.mrf.mxu1 }
 0x29f   :  { %v1274_v27 = vmul.f32 %v3792_v13, %v1268_v23  ;;  %v3758_v13 = vld [vmem:[%s5292_s11 + $0x110] sm:$0xff]  ;;  %v3772_v23 = vld [vmem:[%s5292_s11 + $0x180] sm:$0xff] }
 0x2a1   :  { %v1277_v24 = vadd.f32 %v3793_v22, %v1274_v27  ;;  %v3766_v22 = vld [vmem:[%s5292_s11 + $0x150] sm:$0xff]  ;;  %v3780_v27 = vld [vmem:[%s5292_s11 + $0x1c0] sm:$0xff] }
 0x2a3   :  { %v1278_v25 = vmax.f32 %v1277_v24, 0.0  ;;  %v3757_v24 = vld [vmem:[%s5292_s11 + $0x108] sm:$0xff] }
 0x2a5   :  { %v1279_v26 = vpack.c.bf16 %v1278_v25, %v1278_v25  ;;  %v3765_v25 = vld [vmem:[%s5292_s11 + $0x148] sm:$0xff] }
 0x2a6   :  { %v1270_v31 = vpop.f32.mrf.mxu1 }
 0x2a7   :  { %1690 = vmatmul.bf16.vlgmr.msra.gmra.mxu2 %v1279_v26  ;;  %1703 = vmatmul.bf16.vlgmr.msra.gmra.mxu3 %v1279_v26 }
 0x2a8   :  { %1716 = vmatmul.bf16.vlgmr.msrb.gmra.mxu0 %v1279_v26  ;;  %1729 = vmatmul.bf16.vlgmr.msrb.gmra.mxu1 %v1279_v26 }
 0x2a9   :  { %2344 = vmatpush.bf16.msrb.mxu0 %v3747_v28  ;;  %2357 = vmatpush.bf16.msrb.mxu1 %v3755_v30  ;;  %v3764_v28 = vld [vmem:[%s5292_s11 + $0x140] sm:$0xff] }
 0x2aa   :  { %2318 = vmatpush.bf16.msra.mxu2 %v3731_v33  ;;  %2331 = vmatpush.bf16.msra.mxu3 %v3739_v34  ;;  %v1344_v30 = vld [vmem:[%s5293_s10] sm:$0xff] }
 0x2ab   :  { %v1348_v31 = vperm.slane %v1344_v30, 2  ;;  %v1349_v33 = vperm.slane %v1344_v30, 3 }
 0x2ad   :  { %2345 = vmatpush.bf16.msrb.mxu0 %v3746_v35  ;;  %2358 = vmatpush.bf16.msrb.mxu1 %v3754_v36 }
 0x2ae   :  { %2319 = vmatpush.bf16.msra.mxu2 %v3730_v37  ;;  %2332 = vmatpush.bf16.msra.mxu3 %v3738_v38  ;;  %v1346_v38 = vperm.slane %v1344_v30, 0 }
 0x2b1   :  { %2346 = vmatpush.bf16.msrb.mxu0 %v3745_v39  ;;  %2359 = vmatpush.bf16.msrb.mxu1 %v3753_v40  ;;  %v1347_v39 = vperm.slane %v1344_v30, 1 }
 0x2b2   :  { %2320 = vmatpush.bf16.msra.mxu2 %v3729_v41  ;;  %2333 = vmatpush.bf16.msra.mxu3 %v3737_v42 }
 0x2b5   :  { %2347 = vmatpush.bf16.msrb.mxu0 %v3744_v43  ;;  %2360 = vmatpush.bf16.msrb.mxu1 %v3752_v44 }
 0x2b6   :  { %2321 = vmatpush.bf16.msra.mxu2 %v3728_v45  ;;  %2334 = vmatpush.bf16.msra.mxu3 %v3736_v46 }
 0x2b7   :  { %1742 = vmatmul.bf16.vlgmr.msrb.gmra.mxu2 %v1279_v26  ;;  %1755 = vmatmul.bf16.vlgmr.msrb.gmra.mxu3 %v1279_v26 }
 0x2b8   :  { %1768 = vmatmul.bf16.vlgmr.msra.gmra.mxu0 %v1279_v26  ;;  %1781 = vmatmul.bf16.vlgmr.msra.gmra.mxu1 %v1279_v26  ;;  %v3756_v26 = vld [vmem:[%s5292_s11 + $0x100] sm:$0xff] }
 0x2b9   :  { %2348 = vmatpush.bf16.msrb.mxu0 %v3743_v47  ;;  %2361 = vmatpush.bf16.msrb.mxu1 %v3751_v48 }
 0x2ba   :  { %2322 = vmatpush.bf16.msra.mxu2 %v3727_v29  ;;  %2335 = vmatpush.bf16.msra.mxu3 %v3735_v32 }
 0x2bd   :  { %2349 = vmatpush.bf16.msrb.mxu0 %v3742_v49  ;;  %2362 = vmatpush.bf16.msrb.mxu1 %v3750_v50 }
 0x2be   :  { %2323 = vmatpush.bf16.msra.mxu2 %v3726_v51  ;;  %2336 = vmatpush.bf16.msra.mxu3 %v3734_v52 }
 0x2c1   :  { %2350 = vmatpush.bf16.msrb.mxu0 %v3741_v53  ;;  %2363 = vmatpush.bf16.msrb.mxu1 %v3749_v55  ;;  %v1352_v55 = vperm.slane %v1344_v30, 6 }
 0x2c2   :  { %2324 = vmatpush.bf16.msra.mxu2 %v3725_v56  ;;  %2337 = vmatpush.bf16.msra.mxu3 %v3733_v57  ;;  %v1353_v56 = vperm.slane %v1344_v30, 7 }
 0x2c5   :  { %2351 = vmatpush.bf16.msrb.mxu0 %v3740_v58  ;;  %2364 = vmatpush.bf16.msrb.mxu1 %v3748_v59 }
 0x2c6   :  { %2325 = vmatpush.bf16.msra.mxu2 %v3724_v62  ;;  %2338 = vmatpush.bf16.msra.mxu3 %v3732_v63  ;;  %v1351_v62 = vperm.slane %v1344_v30, 5 }
 0x2c9   :  { %2396 = vmatpush.bf16.msra.mxu0 %v3779_v60  ;;  %2409 = vmatpush.bf16.msra.mxu1 %v3787_v61  ;;  %v1350_v61 = vperm.slane %v1344_v30, 4 }
 0x2ca   :  { %2370 = vmatpush.bf16.msrb.mxu2 %v3763_v0  ;;  %2383 = vmatpush.bf16.msrb.mxu3 %v3771_v1 }
 0x2cd   :  { %2397 = vmatpush.bf16.msra.mxu0 %v3778_v2  ;;  %2410 = vmatpush.bf16.msra.mxu1 %v3786_v3 }
 0x2ce   :  { %2371 = vmatpush.bf16.msrb.mxu2 %v3762_v8  ;;  %2384 = vmatpush.bf16.msrb.mxu3 %v3770_v9 }
 0x2d1   :  { %2398 = vmatpush.bf16.msra.mxu0 %v3777_v6  ;;  %2411 = vmatpush.bf16.msra.mxu1 %v3785_v7 }
 0x2d2   :  { %2372 = vmatpush.bf16.msrb.mxu2 %v3761_v11  ;;  %2385 = vmatpush.bf16.msrb.mxu3 %v3769_v12 }
 0x2d5   :  { %2399 = vmatpush.bf16.msra.mxu0 %v3776_v10  ;;  %2412 = vmatpush.bf16.msra.mxu1 %v3784_v4 }
 0x2d6   :  { %2373 = vmatpush.bf16.msrb.mxu2 %v3760_v16  ;;  %2386 = vmatpush.bf16.msrb.mxu3 %v3768_v5 }
 0x2d9   :  { %2400 = vmatpush.bf16.msra.mxu0 %v3775_v14  ;;  %2413 = vmatpush.bf16.msra.mxu1 %v3783_v15 }
 0x2da   :  { %2374 = vmatpush.bf16.msrb.mxu2 %v3759_v54  ;;  %2387 = vmatpush.bf16.msrb.mxu3 %v3767_v19  ;;  %v3794_v19 = vld [vmem:[%s5294_s12] ss:$0 sm:$0xff] }
 0x2dd   :  { %2401 = vmatpush.bf16.msra.mxu0 %v3774_v17  ;;  %2414 = vmatpush.bf16.msra.mxu1 %v3782_v18 }
 0x2de   :  { %2375 = vmatpush.bf16.msrb.mxu2 %v3758_v13  ;;  %2388 = vmatpush.bf16.msrb.mxu3 %v3766_v22 }
 0x2e1   :  { %2402 = vmatpush.bf16.msra.mxu0 %v3773_v20  ;;  %2415 = vmatpush.bf16.msra.mxu1 %v3781_v21 }
 0x2e2   :  { %2376 = vmatpush.bf16.msrb.mxu2 %v3757_v24  ;;  %2389 = vmatpush.bf16.msrb.mxu3 %v3765_v25 }
 0x2e5   :  { %2403 = vmatpush.bf16.msra.mxu0 %v3772_v23  ;;  %2416 = vmatpush.bf16.msra.mxu1 %v3780_v27 }
 0x2e6   :  { %2377 = vmatpush.bf16.msrb.mxu2 %v3756_v26  ;;  %2390 = vmatpush.bf16.msrb.mxu3 %v3764_v28 }
 0x325   :  { %v1717_v34 = vpop.f32.mrf.mxu0  ;;  %v1730_v35 = vpop.f32.mrf.mxu1 }
 0x326   :  { %v1718_v36 = vadd.f32 %v1717_v34, %v1348_v31  ;;  %v1731_v37 = vadd.f32 %v1730_v35, %v1349_v33 }
 0x328   :  { %v1788_v40 = vmax.f32 %v1718_v36, 0.0  ;;  %v1789_v41 = vmax.f32 %v1731_v37, 0.0 }
 0x32a   :  { %v1796_v42 = vpack.c.bf16 %v1788_v40, %v1788_v40  ;;  %v1797_v43 = vpack.c.bf16 %v1789_v41, %v1789_v41  ;;  %v1691_v44 = vpop.f32.mrf.mxu2  ;;  %v1704_v45 = vpop.f32.mrf.mxu3 }
 0x32b   :  { %v1692_v46 = vadd.f32 %v1691_v44, %v1346_v38  ;;  %v1705_v47 = vadd.f32 %v1704_v45, %v1347_v39 }
 0x32c   :  { %2352 = vmatmul.bf16.vlgmr.msrb.gmra.mxu0 %v1796_v42  ;;  %2365 = vmatmul.bf16.vlgmr.msrb.gmra.mxu1 %v1797_v43 }
 0x32d   :  { %v1786_v48 = vmax.f32 %v1692_v46, 0.0  ;;  %v1787_v29 = vmax.f32 %v1705_v47, 0.0  ;;  %v1719_v32 = vpop.f32.mrf.mxu0  ;;  %v1732_v49 = vpop.f32.mrf.mxu1 }
 0x32f   :  { %v1794_v50 = vpack.c.bf16 %v1786_v48, %v1786_v48  ;;  %v1795_v51 = vpack.c.bf16 %v1787_v29, %v1787_v29 }
 0x331   :  { %2326 = vmatmul.bf16.vlgmr.msra.gmra.mxu2 %v1794_v50  ;;  %2339 = vmatmul.bf16.vlgmr.msra.gmra.mxu3 %v1795_v51 }
 0x332   :  { %v1693_v52 = vpop.f32.mrf.mxu2  ;;  %v1706_v53 = vpop.f32.mrf.mxu3 }
 0x335   :  { %v1769_v57 = vpop.f32.mrf.mxu0  ;;  %v1782_v58 = vpop.f32.mrf.mxu1 }
 0x336   :  { %v1770_v59 = vadd.f32 %v1769_v57, %v1352_v55  ;;  %v1783_v60 = vadd.f32 %v1782_v58, %v1353_v56 }
 0x338   :  { %v1792_v63 = vmax.f32 %v1770_v59, 0.0  ;;  %v1793_v0 = vmax.f32 %v1783_v60, 0.0 }
 0x33a   :  { %v1800_v1 = vpack.c.bf16 %v1792_v63, %v1792_v63  ;;  %v1801_v2 = vpack.c.bf16 %v1793_v0, %v1793_v0  ;;  %v1743_v3 = vpop.f32.mrf.mxu2  ;;  %v1756_v6 = vpop.f32.mrf.mxu3 }
 0x33b   :  { %v1744_v7 = vadd.f32 %v1743_v3, %v1350_v61  ;;  %v1757_v8 = vadd.f32 %v1756_v6, %v1351_v62 }
 0x33c   :  { %2404 = vmatmul.bf16.vlgmr.msra.gmra.mxu0 %v1800_v1  ;;  %2417 = vmatmul.bf16.vlgmr.msra.gmra.mxu1 %v1801_v2 }
 0x33d   :  { %v1790_v9 = vmax.f32 %v1744_v7, 0.0  ;;  %v1791_v10 = vmax.f32 %v1757_v8, 0.0  ;;  %v1771_v4 = vpop.f32.mrf.mxu0  ;;  %v1784_v11 = vpop.f32.mrf.mxu1 }
 0x33f   :  { %v1798_v12 = vpack.c.bf16 %v1790_v9, %v1790_v9  ;;  %v1799_v14 = vpack.c.bf16 %v1791_v10, %v1791_v10 }
 0x341   :  { %2378 = vmatmul.bf16.vlgmr.msrb.gmra.mxu2 %v1798_v12  ;;  %2391 = vmatmul.bf16.vlgmr.msrb.gmra.mxu3 %v1799_v14 }
 0x342   :  { %v1745_v15 = vpop.f32.mrf.mxu2  ;;  %v1758_v16 = vpop.f32.mrf.mxu3 }
 0x3a9   :  { %v2353_v5 = vpop.f32.mrf.mxu0  ;;  %v2366_v17 = vpop.f32.mrf.mxu1 }
 0x3b1   :  { %v2355_v18 = vpop.f32.mrf.mxu0  ;;  %v2368_v54 = vpop.f32.mrf.mxu1 }
 0x3b4   :  { %v2327_v20 = vpop.f32.mrf.mxu2  ;;  %v2340_v21 = vpop.f32.mrf.mxu3 }
 0x3b5   :  { %v2328_v13 = vadd.f32 %v3794_v19, %v2327_v20 }
 0x3b7   :  { %v2341_v27 = vadd.f32 %v2340_v21, %v2328_v13 }
 0x3b9   :  { %v2405_v22 = vpop.f32.mrf.mxu0  ;;  %v2418_v23 = vpop.f32.mrf.mxu1  ;;  %v2354_v26 = vadd.f32 %v2353_v5, %v2341_v27 }
 0x3bb   :  { %v2367_v31 = vadd.f32 %v2366_v17, %v2354_v26 }
 0x3bc   :  { %v2329_v24 = vpop.f32.mrf.mxu2  ;;  %v2342_v25 = vpop.f32.mrf.mxu3 }
 0x3c1   :  { %v2407_v28 = vpop.f32.mrf.mxu0  ;;  %v2420_v30 = vpop.f32.mrf.mxu1 }
 0x3c4   :  { %v2379_v33 = vpop.f32.mrf.mxu2  ;;  %v2392_v34 = vpop.f32.mrf.mxu3 }
 0x3c5   :  { %v2380_v35 = vadd.f32 %v2379_v33, %v2367_v31 }
 0x3c7   :  { %v2393_v36 = vadd.f32 %v2392_v34, %v2380_v35 }
 0x3c9   :  { %v2406_v37 = vadd.f32 %v2405_v22, %v2393_v36 }
 0x3cb   :  { %v2419_v38 = vadd.f32 %v2418_v23, %v2406_v37 }
 0x3cc   :  { %v2381_v39 = vpop.f32.mrf.mxu2  ;;  %v2394_v40 = vpop.f32.mrf.mxu3 }
 0x3cd   :  { %2422 = vst [vmem:[%s5295_s13] sm:$0xff] %v2419_v38 }

</bundles_post_ra>
